<compile_context>
chip_gen: v7x
topology: tpu7x:2x2x1
jax: 0.10.0
libtpu: 0.0.40
codegen_flags: <defaults>
</compile_context>

<pallas_src>
import functools

import jax
import jax.numpy as jnp
import numpy as np
from jax.experimental import pallas as pl
from jax.experimental.pallas import tpu as pltpu


def _sine_layer_kernel(x_ref, w_ref, b_ref, o_ref):
    # x_ref: (tm, K)   w_ref: (K, N)   b_ref: (1, N)   o_ref: (tm, N)
    # omega_0 is already folded into w_ref / b_ref.
    acc = jnp.dot(x_ref[...], w_ref[...], preferred_element_type=jnp.float32)
    acc = acc + b_ref[...]                      # broadcast (1, N) over rows
    o_ref[...] = jnp.sin(acc).astype(o_ref.dtype)


def prepare_sine_layer_params(weight, bias, omega_0):
    """One-time prep: fold omega_0 into W/b and pre-transpose to [K, N].

    weight: [out_features, in_features] (PyTorch nn.Linear layout)
    bias:   [out_features]
    Returns (w_t, b2d) with w_t: [in_features, out_features], b2d: [1, out_features].
    """
    omega = jnp.asarray(omega_0, jnp.float32)
    w_t = (omega * weight.astype(jnp.float32)).T
    b2d = (omega * bias.astype(jnp.float32)).reshape(1, -1)
    return w_t, b2d


@functools.partial(jax.jit, static_argnames=("tm",))
def sine_layer(x, w_t, b2d, *, tm=1024):
    """x: [..., K]; w_t: [K, N] (omega-scaled, pre-transposed); b2d: [1, N]."""
    orig_shape = x.shape
    K = orig_shape[-1]
    N = w_t.shape[1]
    x2d = x.reshape(-1, K)
    M = x2d.shape[0]

    # Sublane-aligned row tile, never larger than the (rounded-up) problem.
    # No explicit padding of x and no output slice: Pallas clamps/masks the
    # partial last block, which is safe for this purely row-wise op.
    tm_eff = min(tm, pl.cdiv(M, 8) * 8)
    grid_m = pl.cdiv(M, tm_eff)

    out = pl.pallas_call(
        _sine_layer_kernel,
        out_shape=jax.ShapeDtypeStruct((M, N), x.dtype),
        grid_spec=pl.GridSpec(
            grid=(grid_m,),
            in_specs=[
                # x row tile: streams through VMEM, one block per grid step.
                pl.BlockSpec((tm_eff, K), lambda i: (i, 0)),
                # Weight / bias: constant block index -> fetched once,
                # resident in VMEM across all M tiles.
                pl.BlockSpec((K, N), lambda i: (0, 0)),
                pl.BlockSpec((1, N), lambda i: (0, 0)),
            ],
            out_specs=pl.BlockSpec((tm_eff, N), lambda i: (i, 0)),
        ),
        compiler_params=pltpu.CompilerParams(
            # Single parallel M axis: v7x shards M tiles across its 2 TCs.
            dimension_semantics=("parallel",),
        ),
    )(x2d, w_t, b2d)

    return out.reshape(*orig_shape[:-1], N)


def _init_sine_layer_params(key, in_features, out_features, *, is_first=False,
                            omega_0=30.0, is_first_initialization=1.0):
    """Deterministic SIREN initialization matching SineLayer.init_weights."""
    kw, kb = jax.random.split(key)
    if is_first:
        bound_w = is_first_initialization / in_features
    else:
        bound_w = np.sqrt(6.0 / in_features) / omega_0
    weight = jax.random.uniform(
        kw, (out_features, in_features), jnp.float32, -bound_w, bound_w)
    # nn.Linear default bias init: U(-1/sqrt(in_features), 1/sqrt(in_features))
    bound_b = 1.0 / np.sqrt(in_features)
    bias = jax.random.uniform(kb, (out_features,), jnp.float32, -bound_b, bound_b)
    return weight, bias


if __name__ == "__main__":
    key = jax.random.PRNGKey(0)
    k_x, k_p = jax.random.split(key)

    in_features = 32
    out_features = 128
    batch_shape = (2, 64)          # leading batch dims; flattened to M = 128 rows
    omega_0 = 30.0

    x = jax.random.normal(k_x, (*batch_shape, in_features), jnp.float32)
    weight, bias = _init_sine_layer_params(
        k_p, in_features, out_features, is_first=True,
        omega_0=omega_0, is_first_initialization=1.0)

    # One-time parameter prep (omega folding + transpose), outside the hot path.
    w_t, b2d = prepare_sine_layer_params(weight, bias, omega_0)

    y = sine_layer(x, w_t, b2d, tm=1024)
    y = jax.block_until_ready(y)

    # Cross-check against plain-JAX reference with the original PyTorch math.
    y_ref = jnp.sin(omega_0 * (x @ weight.T + bias))
    np.testing.assert_allclose(np.asarray(y), np.asarray(y_ref),
                               rtol=1e-4, atol=1e-4)

    print("KERNEL_OK")
</pallas_src>

<mosaic_0001>
module attributes {stable_mosaic.version = 11 : i64} {
  func.func @_sine_layer_kernel(%arg0: i32, %arg1: memref<128x32xf32, #tpu.memory_space<vmem>>, %arg2: memref<32x128xf32, #tpu.memory_space<vmem>>, %arg3: memref<1x128xf32, #tpu.memory_space<vmem>>, %arg4: memref<128x128xf32, #tpu.memory_space<vmem>>) attributes {dimension_semantics = [#tpu.dimension_semantics<parallel>], iteration_bounds = array<i64: 1>, scalar_prefetch = 0 : i64, scratch_operands = 0 : i64, tpu.core_type = #tpu.core_type<tc>, window_params = [{transform_indices = @transform_0, window_bounds = array<i64: 128, 32>}, {pipeline_mode = #tpu.pipeline_mode<synchronous>, transform_indices = @transform_1, window_bounds = array<i64: 32, 128>}, {pipeline_mode = #tpu.pipeline_mode<synchronous>, transform_indices = @transform_2, window_bounds = array<i64: 1, 128>}, {transform_indices = @transform_3, window_bounds = array<i64: 128, 128>}]} {
    %c0 = arith.constant 0 : index
    %c0_0 = arith.constant 0 : index
    %0 = vector.load %arg1[%c0, %c0_0] : memref<128x32xf32, #tpu.memory_space<vmem>>, vector<128x32xf32>
    %c0_1 = arith.constant 0 : index
    %c0_2 = arith.constant 0 : index
    %1 = vector.load %arg2[%c0_1, %c0_2] : memref<32x128xf32, #tpu.memory_space<vmem>>, vector<32x128xf32>
    %cst = arith.constant dense<0.000000e+00> : vector<128x128xf32>
    %2 = tpu.matmul %0, %1, %cst {dimension_numbers = #tpu.dot_dimension_numbers<[1], [0], [0], [1], [0, 0, 1, 1], [], []>} : vector<128x32xf32>, vector<32x128xf32>, vector<128x128xf32> -> vector<128x128xf32>
    %c0_3 = arith.constant 0 : index
    %c0_4 = arith.constant 0 : index
    %3 = vector.load %arg3[%c0_3, %c0_4] : memref<1x128xf32, #tpu.memory_space<vmem>>, vector<1x128xf32>
    %4 = vector.broadcast %3 : vector<1x128xf32> to vector<128x128xf32>
    %5 = arith.addf %2, %4 : vector<128x128xf32>
    %6 = math.sin %5 : vector<128x128xf32>
    %c0_5 = arith.constant 0 : index
    %c0_6 = arith.constant 0 : index
    %7 = vector.load %arg4[%c0_5, %c0_6] : memref<128x128xf32, #tpu.memory_space<vmem>>, vector<128x128xf32>
    tpu.vector_store %arg4[%c0_5, %c0_6], %6 {strides = array<i32>} : memref<128x128xf32, #tpu.memory_space<vmem>>, vector<128x128xf32>,
    return
  }
  func.func @transform_0(%arg0: i32) -> (i32, i32) {
    %c0_i32 = arith.constant 0 : i32
    %c0_i32_0 = arith.constant 0 : i32
    return %arg0, %c0_i32 : i32, i32
  }
  func.func @transform_1(%arg0: i32) -> (i32, i32) {
    %c0_i32 = arith.constant 0 : i32
    %c0_i32_0 = arith.constant 0 : i32
    %c0_i32_1 = arith.constant 0 : i32
    return %c0_i32, %c0_i32_0 : i32, i32
  }
  func.func @transform_2(%arg0: i32) -> (i32, i32) {
    %c0_i32 = arith.constant 0 : i32
    %c0_i32_0 = arith.constant 0 : i32
    %c0_i32_1 = arith.constant 0 : i32
    return %c0_i32, %c0_i32_0 : i32, i32
  }
  func.func @transform_3(%arg0: i32) -> (i32, i32) {
    %c0_i32 = arith.constant 0 : i32
    %c0_i32_0 = arith.constant 0 : i32
    return %arg0, %c0_i32 : i32, i32
  }
}

</mosaic_0001>

<bundles_post_ra>
// kernel: sine_layer.1
= control target key start
LH: loop header
LB: loop body
LE: loop exit
PB: predicated region body
PF: predicated region fallthrough
CT: control target
= control target key end

     0   :  { %vm42_vm0 = vcmask 261120   ;;  %s3659_s0 = inlined_call_operand.vmem [shape: f32[128,32], index: 0, kind: input, shape index: {}]   ;;  %s3660_s1 = inlined_call_operand.vmem [shape: f32[32,128], index: 1, kind: input, shape index: {}]   ;;  %s3661_s2 = inlined_call_operand.vmem [shape: f32[1,128], index: 2, kind: input, shape index: {}]   ;;  %s3662_s3 = inlined_call_operand.hbm [shape: f32[128,128], index: 3, kind: output, shape index: {}]  }
   0x1   :  { %v31_v0 = vld [vmem:[%s3660_s1] sm:$0xff]  ;;  %v32_v1 = vld [vmem:[%s3660_s1 + $0x8] sm:$0xff]  ;;  %v33_v2 = vld [vmem:[%s3660_s1 + $0x10] sm:$0xff] }
   0x2   :  { %v2065_v3 = vpack.c.bf16 %v32_v1, %v31_v0  ;;  %v34_v4 = vld [vmem:[%s3660_s1 + $0x18] sm:$0xff]  ;;  %v15_v5 = vld [vmem:[%s3659_s0] sm:$0xff] }
   0x3   :  { %v23_v6 = vld [vmem:[%s3659_s0 + $0x40] sm:$0xff]  ;;  %v2069_v7 = vpack.c.bf16 %v34_v4, %v33_v2  ;;  %2041 = vmatprep.mubr.msk.f32.mxu0 %vm42_vm0, %v15_v5 }
   0x4   :  { %2053 = vmatprep.mubr.msk.f32.mxu1 %vm42_vm0, %v23_v6  ;;  %2066 = vmatprep.subr.bf16.mxu0 %v2065_v3 }
   0x5   :  { %2073 = vmatprep.subr.bf16.mxu1 %v2065_v3  ;;  %2068 = vmatpush3.bf16.msra.mxu0 %v2065_v3 }
   0x6   :  { %2075 = vmatpush3.bf16.msra.mxu1 %v2065_v3  ;;  %2070 = vmatprep.subr.bf16.mxu0 %v2069_v7 }
   0x7   :  { %2074 = vmatprep.subr.bf16.mxu1 %v2069_v7 }
   0x8   :  { %8 = vsyncpa [#allocation3], 0  ;;  %v16_v8 = vld [vmem:[%s3659_s0 + $0x8] sm:$0xff]  ;;  %v17_v10 = vld [vmem:[%s3659_s0 + $0x10] sm:$0xff]  ;;  %v2240_v63 = vmov 683565275  }
   0x9   :  { %2072 = vmatpush3.bf16.msra.mxu0 %v2069_v7  ;;  %v24_v9 = vld [vmem:[%s3659_s0 + $0x48] sm:$0xff]  ;;  %v25_v11 = vld [vmem:[%s3659_s0 + $0x50] sm:$0xff]  ;;  %v18_v12 = vld [vmem:[%s3659_s0 + $0x18] sm:$0xff]  ;;  %v2241_v3 = vmov 2475754826  }
   0xa   :  { %2076 = vmatpush3.bf16.msra.mxu1 %v2069_v7  ;;  %v26_v13 = vld [vmem:[%s3659_s0 + $0x58] sm:$0xff]  ;;  %v19_v14 = vld [vmem:[%s3659_s0 + $0x20] sm:$0xff]  ;;  %v20_v16 = vld [vmem:[%s3659_s0 + $0x28] sm:$0xff]  ;;  %v2242_v5 = vmov 2131351028  }
   0xb   :  { %v27_v15 = vld [vmem:[%s3659_s0 + $0x60] sm:$0xff]  ;;  %v28_v17 = vld [vmem:[%s3659_s0 + $0x68] sm:$0xff]  ;;  %v21_v18 = vld [vmem:[%s3659_s0 + $0x30] sm:$0xff]  ;;  %v2243_v7 = vmov 2102212464  }
   0xc   :  { %2042 = vmatmul.mubr.msk.f32.vlgmr.msra.gmra.mrb[0].mxu0 %vm42_vm0, %v16_v8  ;;  %v29_v19 = vld [vmem:[%s3659_s0 + $0x70] sm:$0xff]  ;;  %v22_v20 = vld [vmem:[%s3659_s0 + $0x38] sm:$0xff]  ;;  %v2348_v22 = vld [vmem:[%s3661_s2] ss:$0 sm:$0xff] }
   0xd   :  { %2054 = vmatmul.mubr.msk.f32.vlgmr.msra.gmra.mrb[0].mxu1 %vm42_vm0, %v24_v9  ;;  %2044 = vmatprep.mubr.msk.f32.mxu0 %vm42_vm0, %v17_v10  ;;  %v30_v21 = vld [vmem:[%s3659_s0 + $0x78] sm:$0xff]  ;;  %v2244_v9 = vmov 920167782  }
   0xe   :  { %2056 = vmatprep.mubr.msk.f32.mxu1 %vm42_vm0, %v25_v11 }
  0x10   :  { %2045 = vmatmul.mubr.msk.f32.gmra.mrb[2].mxu0 %vm42_vm0, %v18_v12 }
  0x11   :  { %2057 = vmatmul.mubr.msk.f32.gmra.mrb[2].mxu1 %vm42_vm0, %v26_v13  ;;  %2047 = vmatprep.mubr.msk.f32.mxu0 %vm42_vm0, %v19_v14 }
  0x12   :  { %2059 = vmatprep.mubr.msk.f32.mxu1 %vm42_vm0, %v27_v15 }
  0x14   :  { %2048 = vmatmul.mubr.msk.f32.gmra.mrb[4].mxu0 %vm42_vm0, %v20_v16  ;;  %v2245_v16 = vmov 1326507024  }
  0x15   :  { %2060 = vmatmul.mubr.msk.f32.gmra.mrb[4].mxu1 %vm42_vm0, %v28_v17  ;;  %2050 = vmatprep.mubr.msk.f32.mxu0 %vm42_vm0, %v21_v18 }
  0x16   :  { %2062 = vmatprep.mubr.msk.f32.mxu1 %vm42_vm0, %v29_v19 }
  0x18   :  { %2051 = vmatmul.mubr.msk.f32.gmra.mrb[6].mxu0 %vm42_vm0, %v22_v20 }
  0x19   :  { %2063 = vmatmul.mubr.msk.f32.gmra.mrb[6].mxu1 %vm42_vm0, %v30_v21 }
  0xdf   :  { %v2043_v23 = vpop.f32.mrb[0].mxu0 }
  0xe0   :  { %v2055_v24 = vpop.f32.mrb[0].mxu1  ;;  %v2351_v25 = vadd.f32 %v2043_v23, %v2348_v22  ;;  %v157_v27 = vpop.f32.mrb[1].mxu0 }
  0xe1   :  { %v2354_v26 = vadd.f32 %v2055_v24, %v2348_v22  ;;  %v197_v28 = vpop.f32.mrb[1].mxu1  ;;  %v2357_v29 = vadd.f32 %v2348_v22, %v157_v27 }
  0xe2   :  { %v340_v30 = vand.u32 2147483647, %v2351_v25  ;;  %v343_v31 = vand.u32 2139095040, %v2351_v25  ;;  %v2375_v47 = vadd.f32 %v2348_v22, %v197_v28  ;;  %vm342_vm14 = vcmp.lt.s32.totalorder %v2351_v25, 0 }
  0xe3   :  { %v1172_v32 = vand.u32 2147483647, %v2354_v26  ;;  %v1175_v33 = vand.u32 2139095040, %v2354_v26  ;;  %v2363_v34 = vpop.f32.mrb[2].mxu0  ;;  %v239_v40 = vand.u32 2139095040, %v2357_v29 }
  0xe4   :  { %v2365_v35 = vpop.f32.mrb[2].mxu1  ;;  %v344_v36 = vshrl.u32 %v343_v31, 23  ;;  %v347_v37 = vand.u32 8388607, %v340_v30  ;;  %v2372_v42 = vpop.f32.mrb[3].mxu0  ;;  %v1071_v61 = vand.u32 2139095040, %v2375_v47 }
  0xe5   :  { %v1176_v38 = vshrl.u32 %v1175_v33, 23  ;;  %v1179_v39 = vand.u32 8388607, %v1172_v32  ;;  %v240_v44 = vshrl.u32 %v239_v40, 23  ;;  %v236_v50 = vand.u32 2147483647, %v2357_v29 }
  0xe6   :  { %v1953_v41 = vadd.s32 4294967169, %v344_v36  ;;  %v348_v45 = vor.u32 8388608, %v347_v37  ;;  %v2378_v52 = vpop.f32.mrb[3].mxu1  ;;  %vm2478_vm15 = vcmp.le.f32.partialorder %v340_v30, 0.7853982 }
  0xe7   :  { %v1985_v43 = vadd.s32 4294967169, %v1176_v38  ;;  %v1180_v48 = vor.u32 8388608, %v1179_v39  ;;  %v1949_v51 = vadd.s32 4294967169, %v240_v44  ;;  %v2386_v59 = vand.u32 8388607, %v236_v50 }
  0xe8   :  { %v350_v46 = vadd.s32 1, %v1953_v41  ;;  %v2380_v56 = vshll.u32 %v348_v45, 8 }
  0xe9   :  { %v1182_v49 = vadd.s32 1, %v1985_v43  ;;  %v2382_v58 = vshll.u32 %v1180_v48, 8  ;;  %v2388_v60 = vadd.s32 1, %v1949_v51 }
  0xea   :  { %vm351_vm1 = vcmp.gt.s32.totalorder %v350_v46, 0 }
  0xeb   :  { %v352_v53 = vsel %vm351_vm1, %v350_v46, 0  ;;  %vm1183_vm2 = vcmp.gt.s32.totalorder %v1182_v49, 0  ;;  %vm247_vm7 = vcmp.gt.s32.totalorder %v2388_v60, 0 }
  0xec   :  { %v353_v54 = vshrl.u32 %v352_v53, 5  ;;  %v354_v55 = vand.u32 31, %v352_v53  ;;  %v1184_v57 = vsel %vm1183_vm2, %v1182_v49, 0 }
  0xed   :  { %v2392_v1 = vshrl.u32 %v1184_v57, 5  ;;  %v1186_v2 = vand.u32 31, %v1184_v57 }
  0xee   :  { %v355_v62 = vsub.s32 32, %v354_v55  ;;  %v357_v0 = vshll.u32 %v2240_v63, %v354_v55  ;;  %v360_v4 = vshll.u32 %v2241_v3, %v354_v55  ;;  %v363_v6 = vshll.u32 %v2242_v5, %v354_v55 }
  0xef   :  { %v366_v8 = vshll.u32 %v2243_v7, %v354_v55  ;;  %v369_v10 = vshll.u32 %v2244_v9, %v354_v55  ;;  %vm372_vm3 = vcmp.lt.s32.totalorder %v353_v54, 1  ;;  %vm373_vm4 = vcmp.lt.s32.totalorder %v353_v54, 2 }
  0xf0   :  { %v358_v11 = vshrl.u32 %v2241_v3, %v355_v62  ;;  %v361_v12 = vshrl.u32 %v2242_v5, %v355_v62  ;;  %v364_v13 = vshrl.u32 %v2243_v7, %v355_v62  ;;  %v356_v14 = vshrl.u32 %v2240_v63, %v355_v62 }
  0xf1   :  { %v367_v15 = vshrl.u32 %v2244_v9, %v355_v62  ;;  %v370_v17 = vshrl.u32 %v2245_v16, %v355_v62  ;;  %v1187_v21 = vsub.s32 32, %v1186_v2  ;;  %vm374_vm5 = vcmp.lt.s32.totalorder %v353_v54, 3 }
  0xf2   :  { %v359_v18 = vor.u32 %v358_v11, %v357_v0  ;;  %v362_v19 = vor.u32 %v361_v12, %v360_v4  ;;  %v365_v20 = vor.u32 %v364_v13, %v363_v6  ;;  %vm375_vm6 = vcmp.lt.s32.totalorder %v353_v54, 4 }
  0xf3   :  { %v368_v23 = vor.u32 %v367_v15, %v366_v8  ;;  %v371_v24 = vor.u32 %v370_v17, %v369_v10  ;;  %v1189_v39 = vshll.u32 %v2240_v63, %v1186_v2  ;;  %v1190_v43 = vshrl.u32 %v2241_v3, %v1187_v21 }
  0xf4   :  { %v376_v27 = vsel %vm372_vm3, %v356_v14, %v359_v18  ;;  %v377_v28 = vsel %vm375_vm6, %v365_v20, 2102212464  ;;  %v380_v31 = vsel %vm372_vm3, %v359_v18, %v362_v19  ;;  %v384_v33 = vsel %vm372_vm3, %v362_v19, %v365_v20 }
  0xf5   :  { %v378_v36 = vsel %vm374_vm5, %v362_v19, %v377_v28  ;;  %v381_v37 = vsel %vm375_vm6, %v368_v23, 920167782  ;;  %v385_v38 = vsel %vm375_vm6, %v371_v24, 1326507024  ;;  %v1192_v44 = vshll.u32 %v2241_v3, %v1186_v2 }
  0xf6   :  { %v382_v40 = vsel %vm374_vm5, %v365_v20, %v381_v37  ;;  %v386_v41 = vsel %vm374_vm5, %v368_v23, %v385_v38  ;;  %v379_v45 = vsel %vm373_vm4, %v376_v27, %v378_v36  ;;  %v1193_v49 = vshrl.u32 %v2242_v5, %v1187_v21 }
  0xf7   :  { %v383_v46 = vsel %vm373_vm4, %v380_v31, %v382_v40  ;;  %v387_v48 = vsel %vm373_vm4, %v384_v33, %v386_v41  ;;  %v1191_v62 = vor.u32 %v1190_v43, %v1189_v39  ;;  %v1195_v4 = vshll.u32 %v2242_v5, %v1186_v2 }
  0xf8   :  { %v2416_v51 = vmul.u32.u64.low %v2380_v56, %v387_v48  ;;  %v2417_v53 = vmul.u32.u64.high %v2380_v56, %v387_v48, %v2416_v51  ;;  %v2420_v55 = vmul.u32.u64.low %v2380_v56, %v383_v46  ;;  %v2421_v57 = vmul.u32.u64.high %v2380_v56, %v383_v46, %v2420_v55 }
  0xf9   :  { %v1194_v0 = vor.u32 %v1193_v49, %v1192_v44  ;;  %v1196_v6 = vshrl.u32 %v2243_v7, %v1187_v21  ;;  %v1188_v8 = vshrl.u32 %v2240_v63, %v1187_v21  ;;  %v1198_v54 = vshll.u32 %v2243_v7, %v1186_v2 }
  0xfa   :  { %v1199_v10 = vshrl.u32 %v2244_v9, %v1187_v21  ;;  %v1202_v11 = vshrl.u32 %v2245_v16, %v1187_v21  ;;  %v395_v12 = vmul.u32 %v2380_v56, %v379_v45  ;;  %v1201_v14 = vshll.u32 %v2244_v9, %v1186_v2 }
  0xfb   :  { %v1197_v13 = vor.u32 %v1196_v6, %v1195_v4  ;;  %vm1204_vm8 = vcmp.lt.s32.totalorder %v2392_v1, 1  ;;  %vm397_vm9 = vc.u32 %v2417_v53, %v2420_v55  ;;  %v398_v15 = vadd.s32 1, %v2421_v57  ;;  %v2461_v4 = vpop.f32.mrb[4].mxu0 }
  0xfc   :  { %v1200_v17 = vor.u32 %v1199_v10, %v1198_v54  ;;  %vm1205_vm10 = vcmp.lt.s32.totalorder %v2392_v1, 2  ;;  %v1203_v18 = vor.u32 %v1202_v11, %v1201_v14  ;;  %vm1206_vm11 = vcmp.lt.s32.totalorder %v2392_v1, 3 }
  0xfd   :  { %vm1207_vm12 = vcmp.lt.s32.totalorder %v2392_v1, 4  ;;  %v1212_v19 = vsel %vm1204_vm8, %v1191_v62, %v1194_v0  ;;  %v399_v56 = vsel %vm397_vm9, %v398_v15, %v2421_v57  ;;  %v1216_v2 = vsel %vm1204_vm8, %v1194_v0, %v1197_v13 }
  0xfe   :  { %v1209_v20 = vsel %vm1207_vm12, %v1197_v13, 2102212464  ;;  %v1213_v21 = vsel %vm1207_vm12, %v1200_v17, 920167782  ;;  %v400_v23 = vadd.s32 %v399_v56, %v395_v12  ;;  %v1208_v24 = vsel %vm1204_vm8, %v1188_v8, %v1191_v62 }
  0xff   :  { %v1214_v27 = vsel %vm1206_vm11, %v1197_v13, %v1213_v21  ;;  %v1217_v28 = vsel %vm1207_vm12, %v1203_v18, 1326507024  ;;  %v1210_v31 = vsel %vm1206_vm11, %v1194_v0, %v1209_v20  ;;  %v248_v37 = vsel %vm247_vm7, %v2388_v60, 0 }
 0x100   :  { %v1215_v33 = vsel %vm1205_vm10, %v1212_v19, %v1214_v27  ;;  %v1218_v36 = vsel %vm1206_vm11, %v1200_v17, %v1217_v28  ;;  %v401_v38 = vadd.s32 536870912, %v400_v23  ;;  %v1068_v45 = vand.u32 2147483647, %v2375_v47 }
 0x101   :  { %v1219_v39 = vsel %vm1205_vm10, %v1216_v2, %v1218_v36  ;;  %v2446_v40 = vmul.u32.u64.low %v2382_v58, %v1215_v33  ;;  %v2447_v41 = vmul.u32.u64.high %v2382_v58, %v1215_v33, %v2446_v40  ;;  %v1211_v48 = vsel %vm1205_vm10, %v1208_v24, %v1210_v31 }
 0x102   :  { %v2451_v43 = vmul.u32.u64.low %v2382_v58, %v1219_v39  ;;  %v2452_v44 = vmul.u32.u64.high %v2382_v58, %v1219_v39, %v2451_v43  ;;  %v402_v46 = vshrl.u32 %v401_v38, 30  ;;  %v244_v60 = vor.u32 8388608, %v2386_v59 }
 0x103   :  { %v250_v49 = vand.u32 31, %v248_v37  ;;  %v1230_v57 = vadd.s32 1, %v2447_v41  ;;  %v1072_v0 = vshrl.u32 %v1071_v61, 23  ;;  %v1227_v6 = vmul.u32 %v2382_v58, %v1211_v48 }
 0x104   :  { %v403_v51 = vshll.u32 %v402_v46, 30  ;;  %vm1229_vm13 = vc.u32 %v2452_v44, %v2446_v40  ;;  %v2468_v1 = vand.u32 8388607, %v1068_v45  ;;  %v2474_v54 = vshll.u32 %v244_v60, 8 }
 0x105   :  { %v251_v62 = vsub.s32 32, %v250_v49  ;;  %v1231_v8 = vsel %vm1229_vm13, %v1230_v57, %v2447_v41  ;;  %v396_v58 = vadd.s32 %v2420_v55, %v2417_v53  ;;  %v2483_v11 = vshrl.u32 %v248_v37, 5 }
 0x106   :  { %v2471_v59 = vsub.s32 %v400_v23, %v403_v51  ;;  %v1232_v10 = vadd.s32 %v1231_v8, %v1227_v6  ;;  %v1981_v17 = vadd.s32 4294967169, %v1072_v0  ;;  %v426_v18 = vsub.s32 4, %v402_v46 }
 0x107   :  { %v254_v12 = vshrl.u32 %v2241_v3, %v251_v62  ;;  %v257_v14 = vshrl.u32 %v2242_v5, %v251_v62  ;;  %v260_v15 = vshrl.u32 %v2243_v7, %v251_v62  ;;  %v253_v30 = vshll.u32 %v2240_v63, %v250_v49 }
 0x108   :  { %v406_v13 = vsub.s32 0, %v2471_v59  ;;  %v1233_v19 = vadd.s32 536870912, %v1232_v10  ;;  %v1076_v56 = vor.u32 8388608, %v2468_v1  ;;  %v256_v55 = vshll.u32 %v2241_v3, %v250_v49 }
 0x109   :  { %v259_v20 = vshll.u32 %v2242_v5, %v250_v49  ;;  %v263_v21 = vshrl.u32 %v2244_v9, %v251_v62  ;;  %v255_v23 = vor.u32 %v254_v12, %v253_v30  ;;  %v262_v24 = vshll.u32 %v2243_v7, %v250_v49 }
 0x10a   :  { %v1954_v53 = vmin.u32 %v406_v13, %v2471_v59  ;;  %v1234_v2 = vshrl.u32 %v1233_v19, 30  ;;  %v266_v27 = vshrl.u32 %v2245_v16, %v251_v62  ;;  %v258_v31 = vor.u32 %v257_v14, %v256_v55 }
 0x10b   :  { %v261_v33 = vor.u32 %v260_v15, %v259_v20  ;;  %v265_v36 = vshll.u32 %v2244_v9, %v250_v49  ;;  %v427_v37 = vsel %vm342_vm14, %v426_v18, %v402_v46  ;;  %v264_v39 = vor.u32 %v263_v21, %v262_v24 }
 0x10c   :  { %v408_v28 = vclz %v1954_v53  ;;  %v1235_v38 = vshll.u32 %v1234_v2, 30  ;;  %vm268_vm0 = vcmp.lt.s32.totalorder %v2483_v11, 1  ;;  %vm269_vm1 = vcmp.lt.s32.totalorder %v2483_v11, 2 }
 0x10d   :  { %v267_v43 = vor.u32 %v266_v27, %v265_v36  ;;  %vm271_vm2 = vcmp.lt.s32.totalorder %v2483_v11, 4  ;;  %vm1174_vm3 = vcmp.lt.s32.totalorder %v2354_v26, 0  ;;  %v252_v60 = vshrl.u32 %v2240_v63, %v251_v62 }
 0x10e   :  { %v1955_v41 = vadd.s32 4294967294, %v408_v28  ;;  %v2504_v48 = vsub.s32 %v1232_v10, %v1235_v38  ;;  %vm270_vm4 = vcmp.lt.s32.totalorder %v2483_v11, 3  ;;  %v277_v46 = vsel %vm271_vm2, %v264_v39, 920167782 }
 0x10f   :  { %v429_v49 = vsel %vm2478_vm15, 0, %v427_v37  ;;  %v276_v51 = vsel %vm268_vm0, %v255_v23, %v258_v31  ;;  %v278_v57 = vsel %vm270_vm4, %v261_v33, %v277_v46  ;;  %v1258_v8 = vsub.s32 4, %v1234_v2 }
 0x110   :  { %vm1956_vm5 = vcmp.lt.s32.totalorder %v1955_v41, 0  ;;  %v1238_v6 = vsub.s32 0, %v2504_v48  ;;  %v280_v62 = vsel %vm268_vm0, %v258_v31, %v261_v33  ;;  %vm2521_vm6 = vcmp.le.f32.partialorder %v1172_v32, 0.7853982 }
 0x111   :  { %v411_v0 = vsel %vm1956_vm5, 0, %v1955_v41  ;;  %v273_v14 = vsel %vm271_vm2, %v261_v33, 2102212464  ;;  %v281_v15 = vsel %vm271_vm2, %v267_v43, 1326507024  ;;  %v279_v30 = vsel %vm269_vm1, %v276_v51, %v278_v57  ;;  %v2541_v33 = vpop.f32.mrb[4].mxu1 }
 0x112   :  { %v412_v10 = vsub.s32 32, %v411_v0  ;;  %v416_v12 = vsub.s32 4294967266, %v411_v0  ;;  %v413_v18 = vshll.u32 %v2471_v59, %v411_v0  ;;  %v1986_v19 = vmin.u32 %v1238_v6, %v2504_v48 }
 0x113   :  { %v282_v53 = vsel %vm270_vm4, %v264_v39, %v281_v15  ;;  %v1078_v21 = vadd.s32 1, %v1981_v17  ;;  %v433_v24 = vadd.s32 3, %v429_v49  ;;  %v272_v28 = vsel %vm268_vm0, %v252_v60, %v255_v23 }
 0x114   :  { %v414_v32 = vshrl.u32 %v396_v58, %v412_v10  ;;  %v417_v55 = vadd.s32 127, %v416_v12  ;;  %v283_v20 = vsel %vm269_vm1, %v280_v62, %v282_v53  ;;  %v1240_v27 = vclz %v1986_v19 }
 0x115   :  { %v274_v59 = vsel %vm270_vm4, %v258_v31, %v273_v14  ;;  %v2544_v38 = vmul.u32.u64.low %v2474_v54, %v283_v20  ;;  %v2545_v58 = vmul.u32.u64.high %v2474_v54, %v283_v20, %v2544_v38  ;;  %vm1079_vm7 = vcmp.gt.s32.totalorder %v1078_v21, 0 }
 0x116   :  { %v415_v36 = vor.u32 %v414_v32, %v413_v18  ;;  %v418_v37 = vshll.u32 %v417_v55, 23  ;;  %v1987_v39 = vadd.s32 4294967294, %v1240_v27  ;;  %v1228_v23 = vadd.s32 %v2446_v40, %v2452_v44 }
 0x117   :  { %v2548_v41 = vmul.u32.u64.low %v2474_v54, %v279_v30  ;;  %v2549_v17 = vmul.u32.u64.high %v2474_v54, %v279_v30, %v2548_v41  ;;  %v1259_v31 = vsel %vm1174_vm3, %v1258_v8, %v1234_v2  ;;  %v1080_v60 = vsel %vm1079_vm7, %v1078_v21, 0 }
 0x118   :  { %v419_v43 = vor.u32 4788187, %v418_v37  ;;  %v2556_v46 = vand.u32 3, %v433_v24  ;;  %vm1988_vm8 = vcmp.lt.s32.totalorder %v1987_v39, 0  ;;  %v275_v49 = vsel %vm269_vm1, %v272_v28, %v274_v59 }
 0x119   :  { %v1082_v51 = vand.u32 31, %v1080_v60  ;;  %v422_v0 = vcvt.s32.f32 %v415_v36  ;;  %v1243_v6 = vsel %vm1988_vm8, 0, %v1987_v39  ;;  %vm293_vm9 = vc.u32 %v2545_v58, %v2548_v41 }
 0x11a   :  { %v420_v57 = vand.u32 2147483647, %v419_v43  ;;  %v1244_v62 = vsub.s32 32, %v1243_v6  ;;  %v1248_v10 = vsub.s32 4294967266, %v1243_v6  ;;  %v1261_v40 = vsel %vm2521_vm6, 0, %v1259_v31 }
 0x11b   :  { %v294_v44 = vadd.s32 1, %v2549_v17  ;;  %v291_v8 = vmul.u32 %v2474_v54, %v275_v49  ;;  %v2566_v12 = vshrl.u32 %v1080_v60, 5  ;;  %v1083_v11 = vsub.s32 32, %v1082_v51 }
 0x11c   :  { %v423_v2 = vmul.f32 %v422_v0, %v420_v57  ;;  %v1245_v14 = vshll.u32 %v2504_v48, %v1243_v6  ;;  %v1246_v15 = vshrl.u32 %v1228_v23, %v1244_v62  ;;  %v1249_v18 = vadd.s32 127, %v1248_v10 }
 0x11d   :  { %v295_v19 = vsel %vm293_vm9, %v294_v44, %v2549_v17  ;;  %v1085_v32 = vshll.u32 %v2240_v63, %v1082_v51  ;;  %v1086_v55 = vshrl.u32 %v2241_v3, %v1083_v11  ;;  %v1088_v24 = vshll.u32 %v2241_v3, %v1082_v51 }
 0x11e   :  { %v424_v30 = vxor.u32 2147483648, %v423_v2  ;;  %v296_v53 = vadd.s32 %v295_v19, %v291_v8  ;;  %v1247_v20 = vor.u32 %v1246_v15, %v1245_v14  ;;  %v1250_v21 = vshll.u32 %v1249_v18, 23 }
 0x11f   :  { %v1089_v54 = vshrl.u32 %v2242_v5, %v1083_v11  ;;  %v1091_v28 = vshll.u32 %v2242_v5, %v1082_v51  ;;  %v1092_v59 = vshrl.u32 %v2243_v7, %v1083_v11  ;;  %v1087_v38 = vor.u32 %v1086_v55, %v1085_v32 }
 0x120   :  { %v425_v27 = vsel %vm342_vm14, %v424_v30, %v423_v2  ;;  %v297_v48 = vadd.s32 536870912, %v296_v53  ;;  %v1251_v37 = vor.u32 4788187, %v1250_v21  ;;  %v1094_v39 = vshll.u32 %v2243_v7, %v1082_v51 }
 0x121   :  { %v428_v36 = vsel %vm2478_vm15, %v2351_v25, %v425_v27  ;;  %v1254_v17 = vcvt.s32.f32 %v1247_v20  ;;  %v1095_v23 = vshrl.u32 %v2244_v9, %v1083_v11  ;;  %v1090_v60 = vor.u32 %v1089_v54, %v1088_v24 }
 0x122   :  { %2150 = vcosq.f32 %v428_v36  ;;  %v2582_v43 = vshrl.u32 %v297_v48, 30  ;;  %v1252_v31 = vand.u32 2147483647, %v1251_v37  ;;  %v1098_v49 = vshrl.u32 %v2245_v16, %v1083_v11 }
 0x123   :  { %2152 = vsinq.f32 %v428_v36  ;;  %v1096_v0 = vor.u32 %v1095_v23, %v1094_v39  ;;  %v1093_v6 = vor.u32 %v1092_v59, %v1091_v28  ;;  %v1097_v62 = vshll.u32 %v2244_v9, %v1082_v51 }
 0x124   :  { %v299_v57 = vshll.u32 %v2582_v43, 30  ;;  %v1255_v61 = vmul.f32 %v1254_v17, %v1252_v31  ;;  %v1265_v10 = vadd.s32 3, %v1261_v40  ;;  %vm1100_vm10 = vcmp.lt.s32.totalorder %v2566_v12, 1 }
 0x125   :  { %v2593_v2 = vshll.u32 %v1076_v56, 8  ;;  %vm436_vm11 = vcmp.eq.s32.totalorder %v2556_v46, 0  ;;  %v1099_v14 = vor.u32 %v1098_v49, %v1097_v62  ;;  %vm1103_vm12 = vcmp.lt.s32.totalorder %v2566_v12, 4 }
 0x126   :  { %v2588_v44 = vsub.s32 %v296_v53, %v299_v57  ;;  %v1256_v8 = vxor.u32 2147483648, %v1255_v61  ;;  %v1108_v15 = vsel %vm1100_vm10, %v1087_v38, %v1090_v60  ;;  %vm435_vm13 = vcmp.lt.s32.totalorder %v2556_v46, 2 }
 0x127   :  { %v1084_v40 = vshrl.u32 %v2240_v63, %v1083_v11  ;;  %vm1102_vm14 = vcmp.lt.s32.totalorder %v2566_v12, 3  ;;  %v1109_v1 = vsel %vm1103_vm12, %v1096_v0, 920167782  ;;  %vm432_vm15 = vweird.f32 %v2351_v25 }
 0x128   :  { %v302_v51 = vsub.s32 0, %v2588_v44  ;;  %v1257_v56 = vsel %vm1174_vm3, %v1256_v8, %v1255_v61  ;;  %vm238_vm0 = vcmp.lt.s32.totalorder %v2357_v29, 0  ;;  %vm1101_vm1 = vcmp.lt.s32.totalorder %v2566_v12, 2 }
 0x129   :  { %v1105_v18 = vsel %vm1103_vm12, %v1093_v6, 2102212464  ;;  %v1110_v11 = vsel %vm1102_vm14, %v1093_v6, %v1109_v1  ;;  %v1260_v19 = vsel %vm2521_vm6, %v2354_v26, %v1257_v56  ;;  %v1112_v32 = vsel %vm1100_vm10, %v1090_v60, %v1093_v6  ;;  %v2669_v56 = vpop.f32.mrb[5].mxu0 }
 0x12a   :  { %v1950_v30 = vmin.u32 %v302_v51, %v2588_v44  ;;  %v1111_v53 = vsel %vm1101_vm1, %v1108_v15, %v1110_v11  ;;  %2154 = vcosq.f32 %v1260_v19  ;;  %v1113_v55 = vsel %vm1103_vm12, %v1099_v14, 1326507024 }
 0x12b   :  { %v2625_v20 = vmul.u32.u64.low %v2593_v2, %v1111_v53  ;;  %v2626_v21 = vmul.u32.u64.high %v2593_v2, %v1111_v53, %v2625_v20  ;;  %vm439_vm2 = vcmp.eq.s32.totalorder %v2556_v46, 2  ;;  %2156 = vsinq.f32 %v1260_v19 }
 0x12c   :  { %v2151_v24 = vpop.eup %2150  ;;  %v304_v13 = vclz %v1950_v30  ;;  %v322_v54 = vsub.s32 4, %v2582_v43  ;;  %v1104_v28 = vsel %vm1100_vm10, %v1084_v40, %v1087_v38  ;;  %v1106_v59 = vsel %vm1102_vm14, %v1090_v60, %v1105_v18 }
 0x12d   :  { %v2153_v27 = vpop.eup %2152  ;;  %v440_v48 = vxor.u32 2147483648, %v2151_v24  ;;  %v1114_v36 = vsel %vm1102_vm14, %v1096_v0, %v1113_v55  ;;  %v2641_v23 = vadd.f32 %v2363_v34, %v2348_v22  ;;  %v1266_v49 = vand.u32 3, %v1265_v10 }
 0x12e   :  { %v437_v37 = vxor.u32 2147483648, %v2153_v27  ;;  %v1951_v39 = vadd.s32 4294967294, %v304_v13  ;;  %v1115_v17 = vsel %vm1101_vm1, %v1112_v32, %v1114_v36  ;;  %v1107_v0 = vsel %vm1101_vm1, %v1104_v28, %v1106_v59 }
 0x12f   :  { %v441_v31 = vsel %vm439_vm2, %v440_v48, %v2153_v27  ;;  %v2644_v57 = vmul.u32.u64.low %v2593_v2, %v1115_v17  ;;  %v2645_v38 = vmul.u32.u64.high %v2593_v2, %v1115_v17, %v2644_v57  ;;  %v1126_v61 = vadd.s32 1, %v2626_v21 }
 0x130   :  { %v438_v60 = vsel %vm436_vm11, %v2151_v24, %v437_v37  ;;  %vm1952_vm3 = vcmp.lt.s32.totalorder %v1951_v39, 0  ;;  %v292_v34 = vadd.s32 %v2548_v41, %v2545_v58  ;;  %v551_v10 = vand.u32 2139095040, %v2641_v23 }
 0x131   :  { %v442_v6 = vsel %vm435_vm13, %v438_v60, %v441_v31  ;;  %v307_v62 = vsel %vm1952_vm3, 0, %v1951_v39  ;;  %vm1264_vm4 = vweird.f32 %v2354_v26  ;;  %v323_v12 = vsel %vm238_vm0, %v322_v54, %v2582_v43 }
 0x132   :  { %v443_v8 = vsel %vm432_vm15, nan, %v442_v6  ;;  %v308_v14 = vsub.s32 32, %v307_v62  ;;  %v312_v15 = vsub.s32 4294967266, %v307_v62  ;;  %v1123_v46 = vmul.u32 %v2593_v2, %v1107_v0 }
 0x133   :  { %1901 = vst [vmem:[#allocation2 + $0x8] sm:$0xff] %v443_v8  ;;  %vm1125_vm5 = vc.u32 %v2645_v38, %v2625_v20  ;;  %v548_v58 = vand.u32 2147483647, %v2641_v23  ;;  %v552_v41 = vshrl.u32 %v551_v10, 23  ;;  %v309_v25 = vshll.u32 %v2588_v44, %v307_v62 }
 0x134   :  { %v310_v51 = vshrl.u32 %v292_v34, %v308_v14  ;;  %v313_v40 = vadd.s32 127, %v312_v15  ;;  %v1127_v1 = vsel %vm1125_vm5, %v1126_v61, %v2626_v21  ;;  %v2155_v18 = vpop.eup %2154  ;;  %vm1271_vm6 = vcmp.eq.s32.totalorder %v1266_v49, 2 }
 0x135   :  { %vm2673_vm7 = vcmp.le.f32.partialorder %v236_v50, 0.7853982  ;;  %v1128_v2 = vadd.s32 %v1127_v1, %v1123_v46  ;;  %v1961_v11 = vadd.s32 4294967169, %v552_v41  ;;  %v2157_v19 = vpop.eup %2156  ;;  %v1272_v30 = vxor.u32 2147483648, %v2155_v18 }
 0x136   :  { %v311_v53 = vor.u32 %v310_v51, %v309_v25  ;;  %v314_v44 = vshll.u32 %v313_v40, 23  ;;  %v325_v32 = vsel %vm2673_vm7, 0, %v323_v12  ;;  %v1269_v55 = vxor.u32 2147483648, %v2157_v19 }
 0x137   :  { %v1129_v21 = vadd.s32 536870912, %v1128_v2  ;;  %v555_v24 = vand.u32 8388607, %v548_v58  ;;  %v558_v13 = vadd.s32 1, %v1961_v11  ;;  %vm1267_vm8 = vcmp.lt.s32.totalorder %v1266_v49, 2 }
 0x138   :  { %vm1268_vm9 = vcmp.eq.s32.totalorder %v1266_v49, 0  ;;  %v1273_v50 = vsel %vm1271_vm6, %v1272_v30, %v2157_v19  ;;  %v315_v54 = vor.u32 4788187, %v314_v44  ;;  %v329_v48 = vadd.s32 3, %v325_v32 }
 0x139   :  { %v1270_v27 = vsel %vm1268_vm9, %v2155_v18, %v1269_v55  ;;  %v2681_v28 = vshrl.u32 %v1129_v21, 30  ;;  %vm559_vm10 = vcmp.gt.s32.totalorder %v558_v13, 0  ;;  %v318_v37 = vcvt.s32.f32 %v311_v53 }
 0x13a   :  { %v1274_v59 = vsel %vm1267_vm8, %v1270_v27, %v1273_v50  ;;  %v316_v36 = vand.u32 2147483647, %v315_v54  ;;  %v560_v39 = vsel %vm559_vm10, %v558_v13, 0  ;;  %v556_v57 = vor.u32 8388608, %v555_v24  ;;  %v2735_v50 = vpop.f32.mrb[5].mxu1 }
 0x13b   :  { %v1275_v17 = vsel %vm1264_vm4, nan, %v1274_v59  ;;  %v1131_v31 = vshll.u32 %v2681_v28, 30  ;;  %v562_v49 = vand.u32 31, %v560_v39  ;;  %v2686_v0 = vand.u32 3, %v329_v48 }
 0x13c   :  { %1909 = vst [vmem:[#allocation2 + $0x48] sm:$0xff] %v1275_v17  ;;  %v319_v60 = vmul.f32 %v318_v37, %v316_v36  ;;  %v1124_v34 = vadd.s32 %v2625_v20, %v2645_v38  ;;  %v2694_v10 = vadd.f32 %v2365_v35, %v2348_v22  ;;  %v2697_v8 = vshrl.u32 %v560_v39, 5 }
 0x13d   :  { %v2688_v61 = vsub.s32 %v1128_v2, %v1131_v31  ;;  %v563_v62 = vsub.s32 32, %v562_v49  ;;  %v2699_v14 = vshll.u32 %v556_v57, 8  ;;  %v2703_v15 = vadd.f32 %v2348_v22, %v2372_v42 }
 0x13e   :  { %v320_v6 = vxor.u32 2147483648, %v319_v60  ;;  %v565_v20 = vshll.u32 %v2240_v63, %v562_v49  ;;  %v568_v25 = vshll.u32 %v2241_v3, %v562_v49  ;;  %v1154_v42 = vsub.s32 4, %v2681_v28 }
 0x13f   :  { %v1134_v26 = vsub.s32 0, %v2688_v61  ;;  %v566_v38 = vshrl.u32 %v2241_v3, %v563_v62  ;;  %v569_v35 = vshrl.u32 %v2242_v5, %v563_v62  ;;  %v572_v22 = vshrl.u32 %v2243_v7, %v563_v62 }
 0x140   :  { %v321_v12 = vsel %vm238_vm0, %v320_v6, %v319_v60  ;;  %v571_v51 = vshll.u32 %v2242_v5, %v562_v49  ;;  %v1383_v40 = vand.u32 2139095040, %v2694_v10  ;;  %v574_v43 = vshll.u32 %v2243_v7, %v562_v49 }
 0x141   :  { %v324_v46 = vsel %vm2673_vm7, %v2357_v29, %v321_v12  ;;  %v1982_v41 = vmin.u32 %v1134_v26, %v2688_v61  ;;  %v567_v18 = vor.u32 %v566_v38, %v565_v20  ;;  %v570_v2 = vor.u32 %v569_v35, %v568_v25 }
 0x142   :  { %2158 = vcosq.f32 %v324_v46  ;;  %v573_v11 = vor.u32 %v572_v22, %v571_v51  ;;  %v575_v19 = vshrl.u32 %v2244_v9, %v563_v62  ;;  %vm580_vm11 = vcmp.lt.s32.totalorder %v2697_v8, 1 }
 0x143   :  { %2160 = vsinq.f32 %v324_v46  ;;  %v1136_v1 = vclz %v1982_v41  ;;  %v577_v53 = vshll.u32 %v2244_v9, %v562_v49  ;;  %v578_v44 = vshrl.u32 %v2245_v16, %v563_v62 }
 0x144   :  { %vm581_vm12 = vcmp.lt.s32.totalorder %v2697_v8, 2  ;;  %vm335_vm13 = vcmp.eq.s32.totalorder %v2686_v0, 2  ;;  %v564_v32 = vshrl.u32 %v2240_v63, %v563_v62  ;;  %v576_v55 = vor.u32 %v575_v19, %v574_v43 }
 0x145   :  { %v1983_v30 = vadd.s32 4294967294, %v1136_v1  ;;  %vm582_vm14 = vcmp.lt.s32.totalorder %v2697_v8, 3  ;;  %vm583_vm15 = vcmp.lt.s32.totalorder %v2697_v8, 4  ;;  %vm332_vm0 = vcmp.eq.s32.totalorder %v2686_v0, 0 }
 0x146   :  { %vm1070_vm1 = vcmp.lt.s32.totalorder %v2375_v47, 0  ;;  %v579_v21 = vor.u32 %v578_v44, %v577_v53  ;;  %v585_v24 = vsel %vm583_vm15, %v573_v11, 2102212464  ;;  %v588_v13 = vsel %vm580_vm11, %v567_v18, %v570_v2 }
 0x147   :  { %vm1984_vm2 = vcmp.lt.s32.totalorder %v1983_v30, 0  ;;  %vm331_vm3 = vcmp.lt.s32.totalorder %v2686_v0, 2  ;;  %v584_v27 = vsel %vm580_vm11, %v564_v32, %v567_v18  ;;  %v589_v48 = vsel %vm583_vm15, %v576_v55, 920167782 }
 0x148   :  { %v1139_v54 = vsel %vm1984_vm2, 0, %v1983_v30  ;;  %v1384_v59 = vshrl.u32 %v1383_v40, 23  ;;  %vm328_vm4 = vweird.f32 %v2357_v29  ;;  %v590_v39 = vsel %vm582_vm14, %v573_v11, %v589_v48 }
 0x149   :  { %v1140_v36 = vsub.s32 32, %v1139_v54  ;;  %v1144_v37 = vsub.s32 4294967266, %v1139_v54  ;;  %v592_v17 = vsel %vm580_vm11, %v570_v2, %v573_v11  ;;  %vm2749_vm5 = vcmp.le.f32.partialorder %v1068_v45, 0.7853982 }
 0x14a   :  { %v586_v57 = vsel %vm582_vm14, %v570_v2, %v585_v24  ;;  %v591_v60 = vsel %vm581_vm12, %v588_v13, %v590_v39  ;;  %v593_v49 = vsel %vm583_vm15, %v579_v21, 1326507024  ;;  %v1993_v6 = vadd.s32 4294967169, %v1384_v59 }
 0x14b   :  { %v1141_v62 = vshll.u32 %v2688_v61, %v1139_v54  ;;  %v1142_v26 = vshrl.u32 %v1124_v34, %v1140_v36  ;;  %v1145_v12 = vadd.s32 127, %v1144_v37  ;;  %v594_v45 = vsel %vm582_vm14, %v576_v55, %v593_v49 }
 0x14c   :  { %v2159_v20 = vpop.eup %2158  ;;  %v595_v38 = vsel %vm581_vm12, %v592_v17, %v594_v45  ;;  %v2765_v35 = vmul.u32.u64.low %v2699_v14, %v591_v60  ;;  %v2766_v46 = vmul.u32.u64.high %v2699_v14, %v591_v60, %v2765_v35  ;;  %v1390_v41 = vadd.s32 1, %v1993_v6 }
 0x14d   :  { %v2161_v25 = vpop.eup %2160  ;;  %v336_v22 = vxor.u32 2147483648, %v2159_v20  ;;  %v1143_v51 = vor.u32 %v1142_v26, %v1141_v62  ;;  %v1146_v40 = vshll.u32 %v1145_v12, 23  ;;  %v1380_v61 = vand.u32 2147483647, %v2694_v10 }
 0x14e   :  { %v333_v34 = vxor.u32 2147483648, %v2161_v25  ;;  %v2771_v1 = vmul.u32.u64.low %v2699_v14, %v595_v38  ;;  %v2772_v18 = vmul.u32.u64.high %v2699_v14, %v595_v38, %v2771_v1  ;;  %vm1391_vm6 = vcmp.gt.s32.totalorder %v1390_v41, 0 }
 0x14f   :  { %v337_v2 = vsel %vm335_vm13, %v336_v22, %v2161_v25  ;;  %v1147_v11 = vor.u32 4788187, %v1146_v40  ;;  %v587_v43 = vsel %vm581_vm12, %v584_v27, %v586_v57  ;;  %v1392_v19 = vsel %vm1391_vm6, %v1390_v41, 0 }
 0x150   :  { %v334_v30 = vsel %vm332_vm0, %v2159_v20, %v333_v34  ;;  %v1155_v53 = vsel %vm1070_vm1, %v1154_v42, %v2681_v28  ;;  %v606_v44 = vadd.s32 1, %v2766_v46  ;;  %v1394_v32 = vand.u32 31, %v1392_v19 }
 0x151   :  { %v338_v55 = vsel %vm331_vm3, %v334_v30, %v337_v2  ;;  %v1148_v21 = vand.u32 2147483647, %v1147_v11  ;;  %v1150_v24 = vcvt.s32.f32 %v1143_v51  ;;  %v1387_v8 = vand.u32 8388607, %v1380_v61 }
 0x152   :  { %v339_v13 = vsel %vm328_vm4, nan, %v338_v55  ;;  %v603_v54 = vmul.u32 %v2699_v14, %v587_v43  ;;  %vm605_vm7 = vc.u32 %v2772_v18, %v2765_v35  ;;  %v1395_v28 = vsub.s32 32, %v1394_v32 }
 0x153   :  { %1900 = vst [vmem:[#allocation2] sm:$0xff] %v339_v13  ;;  %v1151_v42 = vmul.f32 %v1150_v24, %v1148_v21  ;;  %v1157_v0 = vsel %vm2749_vm5, 0, %v1155_v53  ;;  %v607_v27 = vsel %vm605_vm7, %v606_v44, %v2766_v46  ;;  %v1393_v48 = vshrl.u32 %v1392_v19, 5 }
 0x154   :  { %v608_v59 = vadd.s32 %v607_v27, %v603_v54  ;;  %v1397_v36 = vshll.u32 %v2240_v63, %v1394_v32  ;;  %v1398_v29 = vshrl.u32 %v2241_v3, %v1395_v28  ;;  %v1401_v37 = vshrl.u32 %v2242_v5, %v1395_v28 }
 0x155   :  { %v1152_v14 = vxor.u32 2147483648, %v1151_v42  ;;  %v1400_v39 = vshll.u32 %v2241_v3, %v1394_v32  ;;  %v1403_v17 = vshll.u32 %v2242_v5, %v1394_v32  ;;  %v1404_v57 = vshrl.u32 %v2243_v7, %v1395_v28 }
 0x156   :  { %v609_v60 = vadd.s32 536870912, %v608_v59  ;;  %v1399_v49 = vor.u32 %v1398_v29, %v1397_v36  ;;  %v1406_v6 = vshll.u32 %v2243_v7, %v1394_v32  ;;  %v1407_v62 = vshrl.u32 %v2244_v9, %v1395_v28 }
 0x157   :  { %v1153_v26 = vsel %vm1070_vm1, %v1152_v14, %v1151_v42  ;;  %v1402_v12 = vor.u32 %v1401_v37, %v1400_v39  ;;  %v1405_v45 = vor.u32 %v1404_v57, %v1403_v17  ;;  %v1410_v20 = vshrl.u32 %v2245_v16, %v1395_v28 }
 0x158   :  { %v1156_v38 = vsel %vm2749_vm5, %v2375_v47, %v1153_v26  ;;  %v610_v46 = vshrl.u32 %v609_v60, 30  ;;  %v1408_v41 = vor.u32 %v1407_v62, %v1406_v6  ;;  %v1409_v25 = vshll.u32 %v2244_v9, %v1394_v32 }
 0x159   :  { %2162 = vcosq.f32 %v1156_v38  ;;  %v1161_v22 = vadd.s32 3, %v1157_v0  ;;  %v1388_v51 = vor.u32 8388608, %v1387_v8  ;;  %vm1412_vm8 = vcmp.lt.s32.totalorder %v1393_v48, 1 }
 0x15a   :  { %2164 = vsinq.f32 %v1156_v38  ;;  %v611_v40 = vshll.u32 %v610_v46, 30  ;;  %v1411_v34 = vor.u32 %v1410_v20, %v1409_v25  ;;  %vm1415_vm9 = vcmp.lt.s32.totalorder %v1393_v48, 4 }
 0x15b   :  { %v1396_v1 = vshrl.u32 %v2240_v63, %v1395_v28  ;;  %vm1414_vm10 = vcmp.lt.s32.totalorder %v1393_v48, 3  ;;  %v1420_v2 = vsel %vm1412_vm8, %v1399_v49, %v1402_v12  ;;  %v1421_v31 = vsel %vm1415_vm9, %v1408_v41, 920167782 }
 0x15c   :  { %v2816_v11 = vsub.s32 %v608_v59, %v611_v40  ;;  %vm1413_vm11 = vcmp.lt.s32.totalorder %v1393_v48, 2  ;;  %v1417_v43 = vsel %vm1415_vm9, %v1405_v45, 2102212464  ;;  %v1422_v19 = vsel %vm1414_vm10, %v1405_v45, %v1421_v31 }
 0x15d   :  { %v634_v30 = vsub.s32 4, %v610_v46  ;;  %v1423_v53 = vsel %vm1413_vm11, %v1420_v2, %v1422_v19  ;;  %v1424_v44 = vsel %vm1412_vm8, %v1402_v12, %v1405_v45  ;;  %v1428_v32 = vshll.u32 %v1388_v51, 8 }
 0x15e   :  { %v1162_v55 = vand.u32 3, %v1161_v22  ;;  %v614_v21 = vsub.s32 0, %v2816_v11  ;;  %v1416_v24 = vsel %vm1412_vm8, %v1396_v1, %v1399_v49  ;;  %v1425_v8 = vsel %vm1415_vm9, %v1411_v34, 1326507024 }
 0x15f   :  { %v1418_v13 = vsel %vm1414_vm10, %v1402_v12, %v1417_v43  ;;  %v1426_v54 = vsel %vm1414_vm10, %v1408_v41, %v1425_v8  ;;  %v2827_v28 = vmul.u32.u64.low %v1428_v32, %v1423_v53  ;;  %v2828_v42 = vmul.u32.u64.high %v1428_v32, %v1423_v53, %v2827_v28  ;;  %v2861_v53 = vpop.f32.mrb[6].mxu0 }
 0x160   :  { %vm1160_vm12 = vweird.f32 %v2375_v47  ;;  %vm550_vm13 = vcmp.lt.s32.totalorder %v2641_v23, 0  ;;  %v1962_v0 = vmin.u32 %v614_v21, %v2816_v11  ;;  %v1427_v27 = vsel %vm1413_vm11, %v1424_v44, %v1426_v54 }
 0x161   :  { %v635_v59 = vsel %vm550_vm13, %v634_v30, %v610_v46  ;;  %v2836_v36 = vmul.u32.u64.low %v1428_v32, %v1427_v27  ;;  %v2837_v29 = vmul.u32.u64.high %v1428_v32, %v1427_v27, %v2836_v36  ;;  %v447_v37 = vand.u32 2139095040, %v2703_v15 }
 0x162   :  { %vm2842_vm14 = vcmp.le.f32.partialorder %v548_v58, 0.7853982  ;;  %v616_v39 = vclz %v1962_v0  ;;  %v1419_v17 = vsel %vm1413_vm11, %v1416_v24, %v1418_v13  ;;  %v444_v57 = vand.u32 2147483647, %v2703_v15 }
 0x163   :  { %v2163_v60 = vpop.eup %2162  ;;  %vm1163_vm15 = vcmp.lt.s32.totalorder %v1162_v55, 2  ;;  %vm1164_vm0 = vcmp.eq.s32.totalorder %v1162_v55, 0  ;;  %v1438_v49 = vadd.s32 1, %v2828_v42  ;;  %v448_v6 = vshrl.u32 %v447_v37, 23 }
 0x164   :  { %v2165_v62 = vpop.eup %2164  ;;  %vm1167_vm1 = vcmp.eq.s32.totalorder %v1162_v55, 2  ;;  %v1168_v26 = vxor.u32 2147483648, %v2163_v60  ;;  %v1963_v12 = vadd.s32 4294967294, %v616_v39  ;;  %v637_v58 = vsel %vm2842_vm14, 0, %v635_v59 }
 0x165   :  { %v1165_v45 = vxor.u32 2147483648, %v2165_v62  ;;  %v1435_v20 = vmul.u32 %v1428_v32, %v1419_v17  ;;  %vm1437_vm2 = vc.u32 %v2837_v29, %v2827_v28  ;;  %v1957_v48 = vadd.s32 4294967169, %v448_v6 }
 0x166   :  { %v1169_v38 = vsel %vm1167_vm1, %v1168_v26, %v2165_v62  ;;  %vm1964_vm3 = vcmp.lt.s32.totalorder %v1963_v12, 0  ;;  %v1439_v46 = vsel %vm1437_vm2, %v1438_v49, %v2828_v42  ;;  %v451_v41 = vand.u32 8388607, %v444_v57 }
 0x167   :  { %v1166_v25 = vsel %vm1164_vm0, %v2163_v60, %v1165_v45  ;;  %v619_v22 = vsel %vm1964_vm3, 0, %v1963_v12  ;;  %v1440_v51 = vadd.s32 %v1439_v46, %v1435_v20  ;;  %v454_v40 = vadd.s32 1, %v1957_v48 }
 0x168   :  { %v1170_v34 = vsel %vm1163_vm15, %v1166_v25, %v1169_v38  ;;  %v604_v1 = vadd.s32 %v2765_v35, %v2772_v18  ;;  %v620_v2 = vsub.s32 32, %v619_v22  ;;  %v624_v31 = vsub.s32 4294967266, %v619_v22 }
 0x169   :  { %v1171_v43 = vsel %vm1160_vm12, nan, %v1170_v34  ;;  %v641_v19 = vadd.s32 3, %v637_v58  ;;  %v1441_v30 = vadd.s32 536870912, %v1440_v51  ;;  %vm455_vm4 = vcmp.gt.s32.totalorder %v454_v40, 0 }
 0x16a   :  { %1908 = vst [vmem:[#allocation2 + $0x40] sm:$0xff] %v1171_v43  ;;  %v621_v44 = vshll.u32 %v2816_v11, %v619_v22  ;;  %v622_v32 = vshrl.u32 %v604_v1, %v620_v2  ;;  %v625_v21 = vadd.s32 127, %v624_v31  ;;  %v456_v55 = vsel %vm455_vm4, %v454_v40, 0  ;;  %v2871_v11 = vld [vmem:[%s3661_s2] ss:$0 sm:$0xff] }
 0x16b   :  { %v1442_v24 = vshrl.u32 %v1441_v30, 30  ;;  %v452_v8 = vor.u32 8388608, %v451_v41  ;;  %v458_v13 = vand.u32 31, %v456_v55  ;;  %v2864_v54 = vand.u32 3, %v641_v19 }
 0x16c   :  { %v623_v35 = vor.u32 %v622_v32, %v621_v44  ;;  %v626_v18 = vshll.u32 %v625_v21, 23  ;;  %vm1382_vm5 = vcmp.lt.s32.totalorder %v2694_v10, 0  ;;  %v1436_v27 = vadd.s32 %v2827_v28, %v2837_v29 }
 0x16d   :  { %v1443_v47 = vshll.u32 %v1442_v24, 30  ;;  %v459_v42 = vsub.s32 32, %v458_v13  ;;  %v2875_v59 = vadd.f32 %v2871_v11, %v2378_v52  ;;  %v2879_v36 = vadd.f32 %v2871_v11, %v2461_v4 }
 0x16e   :  { %v627_v0 = vor.u32 4788187, %v626_v18  ;;  %v457_v39 = vshrl.u32 %v456_v55, 5  ;;  %v2884_v60 = vshll.u32 %v452_v8, 8  ;;  %v630_v29 = vcvt.s32.f32 %v623_v35 }
 0x16f   :  { %v2881_v37 = vsub.s32 %v1440_v51, %v1443_v47  ;;  %v462_v17 = vshrl.u32 %v2241_v3, %v459_v42  ;;  %v465_v49 = vshrl.u32 %v2242_v5, %v459_v42  ;;  %v468_v6 = vshrl.u32 %v2243_v7, %v459_v42 }
 0x170   :  { %v628_v28 = vand.u32 2147483647, %v627_v0  ;;  %v1466_v62 = vsub.s32 4, %v1442_v24  ;;  %v461_v26 = vshll.u32 %v2240_v63, %v458_v13  ;;  %v464_v4 = vshll.u32 %v2241_v3, %v458_v13 }
 0x171   :  { %v1446_v52 = vsub.s32 0, %v2881_v37  ;;  %v467_v58 = vshll.u32 %v2242_v5, %v458_v13  ;;  %v470_v45 = vshll.u32 %v2243_v7, %v458_v13  ;;  %v471_v20 = vshrl.u32 %v2244_v9, %v459_v42 }
 0x172   :  { %v631_v12 = vmul.f32 %v630_v29, %v628_v28  ;;  %v463_v38 = vor.u32 %v462_v17, %v461_v26  ;;  %v466_v46 = vor.u32 %v465_v49, %v464_v4  ;;  %v474_v41 = vshrl.u32 %v2245_v16, %v459_v42 }
 0x173   :  { %v1994_v48 = vmin.u32 %v1446_v52, %v2881_v37  ;;  %v469_v22 = vor.u32 %v468_v6, %v467_v58  ;;  %v472_v51 = vor.u32 %v471_v20, %v470_v45  ;;  %v473_v40 = vshll.u32 %v2244_v9, %v458_v13  ;;  %v2909_v13 = vpop.f32.mrb[6].mxu1 }
 0x174   :  { %v632_v25 = vxor.u32 2147483648, %v631_v12  ;;  %v1467_v1 = vsel %vm1382_vm5, %v1466_v62, %v1442_v24  ;;  %v460_v2 = vshrl.u32 %v2240_v63, %v459_v42  ;;  %v1279_v31 = vand.u32 2139095040, %v2875_v59 }
 0x175   :  { %v1448_v34 = vclz %v1994_v48  ;;  %v475_v19 = vor.u32 %v474_v41, %v473_v40  ;;  %vm476_vm6 = vcmp.lt.s32.totalorder %v457_v39, 1  ;;  %vm477_vm7 = vcmp.lt.s32.totalorder %v457_v39, 2 }
 0x176   :  { %v633_v43 = vsel %vm550_vm13, %v632_v25, %v631_v12  ;;  %vm478_vm8 = vcmp.lt.s32.totalorder %v457_v39, 3  ;;  %vm479_vm9 = vcmp.lt.s32.totalorder %v457_v39, 4  ;;  %v484_v21 = vsel %vm476_vm6, %v463_v38, %v466_v46 }
 0x177   :  { %v636_v30 = vsel %vm2842_vm14, %v2641_v23, %v633_v43  ;;  %v1995_v44 = vadd.s32 4294967294, %v1448_v34  ;;  %v481_v32 = vsel %vm479_vm9, %v469_v22, 2102212464  ;;  %v485_v55 = vsel %vm479_vm9, %v472_v51, 920167782 }
 0x178   :  { %2166 = vcosq.f32 %v636_v30  ;;  %v480_v24 = vsel %vm476_vm6, %v460_v2, %v463_v38  ;;  %v486_v8 = vsel %vm478_vm8, %v469_v22, %v485_v55  ;;  %v488_v18 = vsel %vm476_vm6, %v466_v46, %v469_v22 }
 0x179   :  { %2168 = vsinq.f32 %v636_v30  ;;  %vm1996_vm10 = vcmp.lt.s32.totalorder %v1995_v44, 0  ;;  %v487_v14 = vsel %vm477_vm7, %v484_v21, %v486_v8  ;;  %v489_v47 = vsel %vm479_vm9, %v475_v19, 1326507024 }
 0x17a   :  { %v1451_v35 = vsel %vm1996_vm10, 0, %v1995_v44  ;;  %v482_v17 = vsel %vm478_vm8, %v466_v46, %v481_v32  ;;  %v490_v28 = vsel %vm478_vm8, %v472_v51, %v489_v47  ;;  %vm2928_vm11 = vcmp.le.f32.partialorder %v1380_v61, 0.7853982 }
 0x17b   :  { %v1452_v42 = vsub.s32 32, %v1451_v35  ;;  %v1456_v0 = vsub.s32 4294967266, %v1451_v35  ;;  %v1453_v29 = vshll.u32 %v2881_v37, %v1451_v35  ;;  %v491_v49 = vsel %vm477_vm7, %v488_v18, %v490_v28 }
 0x17c   :  { %v2918_v6 = vmul.u32.u64.low %v2884_v60, %v487_v14  ;;  %v2919_v52 = vmul.u32.u64.high %v2884_v60, %v487_v14, %v2918_v6  ;;  %v2923_v4 = vmul.u32.u64.low %v2884_v60, %v491_v49  ;;  %v2924_v12 = vmul.u32.u64.high %v2884_v60, %v491_v49, %v2923_v4 }
 0x17d   :  { %v1454_v62 = vshrl.u32 %v1436_v27, %v1452_v42  ;;  %v1457_v26 = vadd.s32 127, %v1456_v0  ;;  %v483_v37 = vsel %vm477_vm7, %v480_v24, %v482_v17  ;;  %v1280_v45 = vshrl.u32 %v1279_v31, 23 }
 0x17e   :  { %v1469_v38 = vsel %vm2928_vm11, 0, %v1467_v1  ;;  %v502_v27 = vadd.s32 1, %v2919_v52  ;;  %v1276_v46 = vand.u32 2147483647, %v2875_v59  ;;  %v759_v25 = vand.u32 2139095040, %v2879_v36 }
 0x17f   :  { %v1455_v20 = vor.u32 %v1454_v62, %v1453_v29  ;;  %v1458_v48 = vshll.u32 %v1457_v26, 23  ;;  %v1989_v41 = vadd.s32 4294967169, %v1280_v45  ;;  %vm644_vm12 = vcmp.eq.s32.totalorder %v2864_v54, 0 }
 0x180   :  { %v499_v22 = vmul.u32 %v2884_v60, %v483_v37  ;;  %vm501_vm13 = vc.u32 %v2924_v12, %v2918_v6  ;;  %vm647_vm14 = vcmp.eq.s32.totalorder %v2864_v54, 2  ;;  %v1473_v51 = vadd.s32 3, %v1469_v38 }
 0x181   :  { %v1459_v61 = vor.u32 4788187, %v1458_v48  ;;  %v503_v40 = vsel %vm501_vm13, %v502_v27, %v2919_v52  ;;  %v1286_v34 = vadd.s32 1, %v1989_v41  ;;  %v1462_v43 = vcvt.s32.f32 %v1455_v20 }
 0x182   :  { %v2167_v39 = vpop.eup %2166  ;;  %v504_v19 = vadd.s32 %v503_v40, %v499_v22  ;;  %v1283_v44 = vand.u32 8388607, %v1276_v46  ;;  %v760_v60 = vshrl.u32 %v759_v25, 23  ;;  %vm640_vm0 = vweird.f32 %v2641_v23 }
 0x183   :  { %v2169_v1 = vpop.eup %2168  ;;  %v648_v2 = vxor.u32 2147483648, %v2167_v39  ;;  %v1460_v31 = vand.u32 2147483647, %v1459_v61  ;;  %vm1287_vm15 = vcmp.gt.s32.totalorder %v1286_v34, 0  ;;  %vm643_vm1 = vcmp.lt.s32.totalorder %v2864_v54, 2 }
 0x184   :  { %v645_v30 = vxor.u32 2147483648, %v2169_v1  ;;  %v505_v55 = vadd.s32 536870912, %v504_v19  ;;  %v1288_v24 = vsel %vm1287_vm15, %v1286_v34, 0  ;;  %v2950_v47 = vand.u32 3, %v1473_v51 }
 0x185   :  { %v649_v32 = vsel %vm647_vm14, %v648_v2, %v2169_v1  ;;  %v1463_v21 = vmul.f32 %v1462_v43, %v1460_v31  ;;  %v1290_v35 = vand.u32 31, %v1288_v24  ;;  %v1284_v17 = vor.u32 8388608, %v1283_v44 }
 0x186   :  { %v646_v8 = vsel %vm644_vm12, %v2167_v39, %v645_v30  ;;  %v2952_v42 = vshrl.u32 %v505_v55, 30  ;;  %v756_v29 = vand.u32 2147483647, %v2879_v36  ;;  %v1969_v52 = vadd.s32 4294967169, %v760_v60 }
 0x187   :  { %v650_v14 = vsel %vm643_vm1, %v646_v8, %v649_v32  ;;  %v1464_v18 = vxor.u32 2147483648, %v1463_v21  ;;  %v1291_v28 = vsub.s32 32, %v1290_v35  ;;  %v1293_v54 = vshll.u32 %v2240_v63, %v1290_v35 }
 0x188   :  { %v651_v0 = vsel %vm640_vm0, nan, %v650_v14  ;;  %v507_v49 = vshll.u32 %v2952_v42, 30  ;;  %v1296_v4 = vshll.u32 %v2241_v3, %v1290_v35  ;;  %v1299_v20 = vshll.u32 %v2242_v5, %v1290_v35 }
 0x189   :  { %1903 = vst [vmem:[#allocation2 + $0x18] sm:$0xff] %v651_v0  ;;  %v1465_v23 = vsel %vm1382_vm5, %v1464_v18, %v1463_v21  ;;  %v1294_v26 = vshrl.u32 %v2241_v3, %v1291_v28  ;;  %v1297_v37 = vshrl.u32 %v2242_v5, %v1291_v28  ;;  %v1300_v48 = vshrl.u32 %v2243_v7, %v1291_v28 }
 0x18a   :  { %v1468_v62 = vsel %vm2928_vm11, %v2694_v10, %v1465_v23  ;;  %v2965_v45 = vsub.s32 %v504_v19, %v507_v49  ;;  %v500_v38 = vadd.s32 %v2918_v6, %v2924_v12  ;;  %v1289_v27 = vshrl.u32 %v1288_v24, 5 }
 0x18b   :  { %2170 = vcosq.f32 %v1468_v62  ;;  %v2971_v58 = vshll.u32 %v1284_v17, 8  ;;  %v1295_v25 = vor.u32 %v1294_v26, %v1293_v54  ;;  %v1298_v61 = vor.u32 %v1297_v37, %v1296_v4  ;;  %v3001_v37 = vpop.f32.mrb[7].mxu0 }
 0x18c   :  { %2172 = vsinq.f32 %v1468_v62  ;;  %v510_v41 = vsub.s32 0, %v2965_v45  ;;  %v1301_v22 = vor.u32 %v1300_v48, %v1299_v20  ;;  %v1302_v39 = vshll.u32 %v2243_v7, %v1290_v35 }
 0x18d   :  { %v1303_v51 = vshrl.u32 %v2244_v9, %v1291_v28  ;;  %v1305_v40 = vshll.u32 %v2244_v9, %v1290_v35  ;;  %v1306_v34 = vshrl.u32 %v2245_v16, %v1291_v28  ;;  %vm1479_vm2 = vcmp.eq.s32.totalorder %v2950_v47, 2 }
 0x18e   :  { %v1958_v6 = vmin.u32 %v510_v41, %v2965_v45  ;;  %v530_v12 = vsub.s32 4, %v2952_v42  ;;  %v2983_v1 = vand.u32 8388607, %v756_v29  ;;  %v766_v2 = vadd.s32 1, %v1969_v52 }
 0x18f   :  { %vm1476_vm3 = vcmp.eq.s32.totalorder %v2950_v47, 0  ;;  %v1292_v31 = vshrl.u32 %v2240_v63, %v1291_v28  ;;  %v1304_v43 = vor.u32 %v1303_v51, %v1302_v39  ;;  %v1307_v19 = vor.u32 %v1306_v34, %v1305_v40 }
 0x190   :  { %vm1308_vm4 = vcmp.lt.s32.totalorder %v1289_v27, 1  ;;  %vm1475_vm5 = vcmp.lt.s32.totalorder %v2950_v47, 2  ;;  %vm446_vm6 = vcmp.lt.s32.totalorder %v2703_v15, 0  ;;  %v512_v30 = vclz %v1958_v6 }
 0x191   :  { %vm1309_vm7 = vcmp.lt.s32.totalorder %v1289_v27, 2  ;;  %vm1310_vm8 = vcmp.lt.s32.totalorder %v1289_v27, 3  ;;  %vm1311_vm9 = vcmp.lt.s32.totalorder %v1289_v27, 4  ;;  %vm1472_vm10 = vweird.f32 %v2694_v10 }
 0x192   :  { %v1313_v44 = vsel %vm1311_vm9, %v1301_v22, 2102212464  ;;  %v1316_v60 = vsel %vm1308_vm4, %v1295_v25, %v1298_v61  ;;  %v1317_v32 = vsel %vm1311_vm9, %v1304_v43, 920167782  ;;  %v1320_v21 = vsel %vm1308_vm4, %v1298_v61, %v1301_v22 }
 0x193   :  { %v1959_v55 = vadd.s32 4294967294, %v512_v30  ;;  %v1312_v24 = vsel %vm1308_vm4, %v1292_v31, %v1295_v25  ;;  %v1318_v8 = vsel %vm1310_vm8, %v1301_v22, %v1317_v32  ;;  %v1321_v35 = vsel %vm1311_vm9, %v1307_v19, 1326507024 }
 0x194   :  { %v1314_v14 = vsel %vm1310_vm8, %v1298_v61, %v1313_v44  ;;  %v1319_v18 = vsel %vm1309_vm7, %v1316_v60, %v1318_v8  ;;  %v1322_v0 = vsel %vm1310_vm8, %v1304_v43, %v1321_v35  ;;  %vm767_vm11 = vcmp.gt.s32.totalorder %v766_v2, 0 }
 0x195   :  { %v2171_v17 = vpop.eup %2170  ;;  %vm1960_vm12 = vcmp.lt.s32.totalorder %v1959_v55, 0  ;;  %v1323_v28 = vsel %vm1309_vm7, %v1320_v21, %v1322_v0  ;;  %v2993_v23 = vmul.u32.u64.low %v2971_v58, %v1319_v18  ;;  %v2994_v49 = vmul.u32.u64.high %v2971_v58, %v1319_v18, %v2993_v23 }
 0x196   :  { %v2173_v54 = vpop.eup %2172  ;;  %v1480_v52 = vxor.u32 2147483648, %v2171_v17  ;;  %v515_v62 = vsel %vm1960_vm12, 0, %v1959_v55  ;;  %v2998_v26 = vmul.u32.u64.low %v2971_v58, %v1323_v28  ;;  %v2999_v4 = vmul.u32.u64.high %v2971_v58, %v1323_v28, %v2998_v26 }
 0x197   :  { %v1477_v20 = vxor.u32 2147483648, %v2173_v54  ;;  %v516_v48 = vsub.s32 32, %v515_v62  ;;  %v520_v41 = vsub.s32 4294967266, %v515_v62  ;;  %v1315_v25 = vsel %vm1309_vm7, %v1312_v24, %v1314_v14 }
 0x198   :  { %v1481_v61 = vsel %vm1479_vm2, %v1480_v52, %v2173_v54  ;;  %v517_v22 = vshll.u32 %v2965_v45, %v515_v62  ;;  %v764_v39 = vor.u32 8388608, %v2983_v1  ;;  %v768_v51 = vsel %vm767_vm11, %v766_v2, 0 }
 0x199   :  { %v1478_v40 = vsel %vm1476_vm3, %v2171_v17, %v1477_v20  ;;  %v518_v34 = vshrl.u32 %v500_v38, %v516_v48  ;;  %v521_v6 = vadd.s32 127, %v520_v41  ;;  %v1334_v31 = vadd.s32 1, %v2994_v49 }
 0x19a   :  { %v1482_v27 = vsel %vm1475_vm5, %v1478_v40, %v1481_v61  ;;  %v531_v43 = vsel %vm446_vm6, %v530_v12, %v2952_v42  ;;  %v1331_v45 = vmul.u32 %v2971_v58, %v1315_v25  ;;  %vm1333_vm13 = vc.u32 %v2999_v4, %v2993_v23 }
 0x19b   :  { %v1483_v1 = vsel %vm1472_vm10, nan, %v1482_v27  ;;  %v519_v2 = vor.u32 %v518_v34, %v517_v22  ;;  %v522_v38 = vshll.u32 %v521_v6, 23  ;;  %v1335_v19 = vsel %vm1333_vm13, %v1334_v31, %v2994_v49 }
 0x19c   :  { %1911 = vst [vmem:[#allocation2 + $0x58] sm:$0xff] %v1483_v1  ;;  %vm3025_vm14 = vcmp.le.f32.partialorder %v444_v57, 0.7853982  ;;  %v1336_v42 = vadd.s32 %v1335_v19, %v1331_v45  ;;  %v770_v12 = vand.u32 31, %v768_v51  ;;  %v3031_v44 = vshll.u32 %v764_v39, 8 }
 0x19d   :  { %v523_v58 = vor.u32 4788187, %v522_v38  ;;  %v533_v30 = vsel %vm3025_vm14, 0, %v531_v43  ;;  %v526_v10 = vcvt.s32.f32 %v519_v2  ;;  %v3033_v32 = vshrl.u32 %v768_v51, 5 }
 0x19e   :  { %v1337_v60 = vadd.s32 536870912, %v1336_v42  ;;  %v771_v21 = vsub.s32 32, %v770_v12  ;;  %v773_v24 = vshll.u32 %v2240_v63, %v770_v12  ;;  %v776_v57 = vshll.u32 %v2241_v3, %v770_v12 }
 0x19f   :  { %v524_v55 = vand.u32 2147483647, %v523_v58  ;;  %v779_v8 = vshll.u32 %v2242_v5, %v770_v12  ;;  %v782_v0 = vshll.u32 %v2243_v7, %v770_v12  ;;  %v537_v52 = vadd.s32 3, %v533_v30 }
 0x1a0   :  { %v1338_v35 = vshrl.u32 %v1337_v60, 30  ;;  %v774_v14 = vshrl.u32 %v2241_v3, %v771_v21  ;;  %v777_v18 = vshrl.u32 %v2242_v5, %v771_v21  ;;  %v780_v28 = vshrl.u32 %v2243_v7, %v771_v21 }
 0x1a1   :  { %v527_v17 = vmul.f32 %v526_v10, %v524_v55  ;;  %v783_v49 = vshrl.u32 %v2244_v9, %v771_v21  ;;  %v786_v54 = vshrl.u32 %v2245_v16, %v771_v21  ;;  %v785_v61 = vshll.u32 %v2244_v9, %v770_v12  ;;  %v3082_v10 = vpop.f32.mrb[7].mxu1 }
 0x1a2   :  { %v1339_v62 = vshll.u32 %v1338_v35, 30  ;;  %v775_v26 = vor.u32 %v774_v14, %v773_v24  ;;  %v778_v20 = vor.u32 %v777_v18, %v776_v57  ;;  %v781_v41 = vor.u32 %v780_v28, %v779_v8 }
 0x1a3   :  { %v528_v48 = vxor.u32 2147483648, %v527_v17  ;;  %v784_v25 = vor.u32 %v783_v49, %v782_v0  ;;  %vm788_vm15 = vcmp.lt.s32.totalorder %v3033_v32, 1  ;;  %vm791_vm0 = vcmp.lt.s32.totalorder %v3033_v32, 4 }
 0x1a4   :  { %v3045_v22 = vsub.s32 %v1336_v42, %v1339_v62  ;;  %v3051_v39 = vadd.f32 %v2871_v11, %v2541_v33  ;;  %v787_v40 = vor.u32 %v786_v54, %v785_v61  ;;  %v796_v34 = vsel %vm788_vm15, %v775_v26, %v778_v20 }
 0x1a5   :  { %v529_v51 = vsel %vm446_vm6, %v528_v48, %v527_v17  ;;  %v797_v6 = vsel %vm791_vm0, %v784_v25, 920167782  ;;  %vm789_vm1 = vcmp.lt.s32.totalorder %v3033_v32, 2  ;;  %vm790_vm2 = vcmp.lt.s32.totalorder %v3033_v32, 3 }
 0x1a6   :  { %v532_v31 = vsel %vm3025_vm14, %v2703_v15, %v529_v51  ;;  %v1342_v27 = vsub.s32 0, %v3045_v22  ;;  %v1362_v33 = vsub.s32 4, %v1338_v35  ;;  %v772_v43 = vshrl.u32 %v2240_v63, %v771_v21 }
 0x1a7   :  { %2174 = vcosq.f32 %v532_v31  ;;  %v798_v45 = vsel %vm790_vm2, %v781_v41, %v797_v6  ;;  %v793_v2 = vsel %vm791_vm0, %v781_v41, 2102212464  ;;  %v800_v19 = vsel %vm788_vm15, %v778_v20, %v781_v41 }
 0x1a8   :  { %2176 = vsinq.f32 %v532_v31  ;;  %v1990_v1 = vmin.u32 %v1342_v27, %v3045_v22  ;;  %v799_v38 = vsel %vm789_vm1, %v796_v34, %v798_v45  ;;  %v801_v47 = vsel %vm791_vm0, %v787_v40, 1326507024 }
 0x1a9   :  { %v3078_v42 = vmul.u32.u64.low %v3031_v44, %v799_v38  ;;  %v3079_v12 = vmul.u32.u64.high %v3031_v44, %v799_v38, %v3078_v42  ;;  %v538_v58 = vand.u32 3, %v537_v52  ;;  %v792_v60 = vsel %vm788_vm15, %v772_v43, %v775_v26 }
 0x1aa   :  { %v1344_v30 = vclz %v1990_v1  ;;  %v794_v21 = vsel %vm790_vm2, %v778_v20, %v793_v2  ;;  %v802_v55 = vsel %vm790_vm2, %v784_v25, %v801_v47  ;;  %v1591_v24 = vand.u32 2139095040, %v3051_v39 }
 0x1ab   :  { %vm3093_vm3 = vcmp.le.f32.partialorder %v1276_v46, 0.7853982  ;;  %vm1278_vm4 = vcmp.lt.s32.totalorder %v2875_v59, 0  ;;  %v803_v14 = vsel %vm789_vm1, %v800_v19, %v802_v55  ;;  %v1588_v28 = vand.u32 2147483647, %v3051_v39 }
 0x1ac   :  { %v1991_v8 = vadd.s32 4294967294, %v1344_v30  ;;  %v1363_v18 = vsel %vm1278_vm4, %v1362_v33, %v1338_v35  ;;  %v3103_v0 = vmul.u32.u64.low %v3031_v44, %v803_v14  ;;  %v3104_v17 = vmul.u32.u64.high %v3031_v44, %v803_v14, %v3103_v0 }
 0x1ad   :  { %vm536_vm5 = vweird.f32 %v2703_v15  ;;  %v795_v46 = vsel %vm789_vm1, %v792_v60, %v794_v21  ;;  %v814_v49 = vadd.s32 1, %v3079_v12  ;;  %v1592_v54 = vshrl.u32 %v1591_v24, 23 }
 0x1ae   :  { %vm1992_vm6 = vcmp.lt.s32.totalorder %v1991_v8, 0  ;;  %vm539_vm7 = vcmp.lt.s32.totalorder %v538_v58, 2  ;;  %vm543_vm8 = vcmp.eq.s32.totalorder %v538_v58, 2  ;;  %v1332_v35 = vadd.s32 %v2993_v23, %v2999_v4 }
 0x1af   :  { %v1347_v52 = vsel %vm1992_vm6, 0, %v1991_v8  ;;  %v1365_v20 = vsel %vm3093_vm3, 0, %v1363_v18  ;;  %v2001_v48 = vadd.s32 4294967169, %v1592_v54  ;;  %v811_v32 = vmul.u32 %v3031_v44, %v795_v46 }
 0x1b0   :  { %v1348_v62 = vsub.s32 32, %v1347_v52  ;;  %v1352_v26 = vsub.s32 4294967266, %v1347_v52  ;;  %v1349_v25 = vshll.u32 %v3045_v22, %v1347_v52  ;;  %vm813_vm9 = vc.u32 %v3104_v17, %v3078_v42 }
 0x1b1   :  { %v2175_v41 = vpop.eup %2174  ;;  %v1595_v61 = vand.u32 8388607, %v1588_v28  ;;  %v815_v34 = vsel %vm813_vm9, %v814_v49, %v3079_v12  ;;  %v1598_v27 = vadd.s32 1, %v2001_v48  ;;  %v3124_v22 = vadd.f32 %v2871_v11, %v2669_v56 }
 0x1b2   :  { %v2177_v51 = vpop.eup %2176  ;;  %v544_v23 = vxor.u32 2147483648, %v2175_v41  ;;  %v1350_v4 = vshrl.u32 %v1332_v35, %v1348_v62  ;;  %v1353_v40 = vadd.s32 127, %v1352_v26  ;;  %v816_v31 = vadd.s32 %v815_v34, %v811_v32 }
 0x1b3   :  { %v541_v6 = vxor.u32 2147483648, %v2177_v51  ;;  %vm540_vm10 = vcmp.eq.s32.totalorder %v538_v58, 0  ;;  %v1369_v1 = vadd.s32 3, %v1365_v20  ;;  %vm1599_vm11 = vcmp.gt.s32.totalorder %v1598_v27, 0 }
 0x1b4   :  { %v545_v44 = vsel %vm543_vm8, %v544_v23, %v2177_v51  ;;  %v1351_v33 = vor.u32 %v1350_v4, %v1349_v25  ;;  %v1354_v43 = vshll.u32 %v1353_v40, 23  ;;  %v817_v2 = vadd.s32 536870912, %v816_v31 }
 0x1b5   :  { %v542_v45 = vsel %vm540_vm10, %v2175_v41, %v541_v6  ;;  %v1596_v47 = vor.u32 8388608, %v1595_v61  ;;  %v1600_v12 = vsel %vm1599_vm11, %v1598_v27, 0  ;;  %v655_v21 = vand.u32 2139095040, %v3124_v22 }
 0x1b6   :  { %v546_v38 = vsel %vm539_vm7, %v542_v45, %v545_v44  ;;  %v1355_v19 = vor.u32 4788187, %v1354_v43  ;;  %v818_v60 = vshrl.u32 %v817_v2, 30  ;;  %v1602_v56 = vand.u32 31, %v1600_v12 }
 0x1b7   :  { %v547_v30 = vsel %vm536_vm5, nan, %v546_v38  ;;  %v1358_v24 = vcvt.s32.f32 %v1351_v33  ;;  %vm758_vm12 = vcmp.lt.s32.totalorder %v2879_v36, 0  ;;  %v3132_v8 = vand.u32 3, %v1369_v1 }
 0x1b8   :  { %1902 = vst [vmem:[#allocation2 + $0x10] sm:$0xff] %v547_v30  ;;  %v1356_v55 = vand.u32 2147483647, %v1355_v19  ;;  %vm3136_vm13 = vcmp.le.f32.partialorder %v756_v29, 0.7853982  ;;  %v819_v14 = vshll.u32 %v818_v60, 30  ;;  %v812_v46 = vadd.s32 %v3078_v42, %v3104_v17 }
 0x1b9   :  { %v1603_v15 = vsub.s32 32, %v1602_v56  ;;  %v652_v18 = vand.u32 2147483647, %v3124_v22  ;;  %v842_v49 = vsub.s32 4, %v818_v60  ;;  %v3143_v54 = vshll.u32 %v1596_v47, 8 }
 0x1ba   :  { %v1359_v0 = vmul.f32 %v1358_v24, %v1356_v55  ;;  %v3145_v35 = vsub.s32 %v816_v31, %v819_v14  ;;  %v3147_v52 = vshrl.u32 %v1600_v12, 5  ;;  %v656_v62 = vshrl.u32 %v655_v21, 23 }
 0x1bb   :  { %v1606_v29 = vshrl.u32 %v2241_v3, %v1603_v15  ;;  %v1605_v20 = vshll.u32 %v2240_v63, %v1602_v56  ;;  %v1609_v48 = vshrl.u32 %v2242_v5, %v1603_v15  ;;  %v1612_v41 = vshrl.u32 %v2243_v7, %v1603_v15 }
 0x1bc   :  { %v1360_v26 = vxor.u32 2147483648, %v1359_v0  ;;  %v822_v25 = vsub.s32 0, %v3145_v35  ;;  %v1608_v42 = vshll.u32 %v2241_v3, %v1602_v56  ;;  %v1611_v17 = vshll.u32 %v2242_v5, %v1602_v56 }
 0x1bd   :  { %v1615_v32 = vshrl.u32 %v2244_v9, %v1603_v15  ;;  %v843_v51 = vsel %vm758_vm12, %v842_v49, %v818_v60  ;;  %v1607_v23 = vor.u32 %v1606_v29, %v1605_v20  ;;  %v1614_v4 = vshll.u32 %v2243_v7, %v1602_v56 }
 0x1be   :  { %v1361_v61 = vsel %vm1278_vm4, %v1360_v26, %v1359_v0  ;;  %v1970_v34 = vmin.u32 %v822_v25, %v3145_v35  ;;  %v1610_v6 = vor.u32 %v1609_v48, %v1608_v42  ;;  %v1613_v31 = vor.u32 %v1612_v41, %v1611_v17 }
 0x1bf   :  { %v1364_v40 = vsel %vm3093_vm3, %v2875_v59, %v1361_v61  ;;  %v1616_v27 = vor.u32 %v1615_v32, %v1614_v4  ;;  %v1617_v44 = vshll.u32 %v2244_v9, %v1602_v56  ;;  %v1618_v33 = vshrl.u32 %v2245_v16, %v1603_v15 }
 0x1c0   :  { %2178 = vcosq.f32 %v1364_v40  ;;  %v824_v43 = vclz %v1970_v34  ;;  %v1965_v45 = vadd.s32 4294967169, %v656_v62  ;;  %v3170_v1 = vand.u32 8388607, %v652_v18 }
 0x1c1   :  { %2180 = vsinq.f32 %v1364_v40  ;;  %v845_v57 = vsel %vm3136_vm13, 0, %v843_v51  ;;  %v1604_v2 = vshrl.u32 %v2240_v63, %v1603_v15  ;;  %v1619_v38 = vor.u32 %v1618_v33, %v1617_v44 }
 0x1c2   :  { %vm1620_vm14 = vcmp.lt.s32.totalorder %v3147_v52, 1  ;;  %v1971_v19 = vadd.s32 4294967294, %v824_v43  ;;  %vm1622_vm15 = vcmp.lt.s32.totalorder %v3147_v52, 3  ;;  %vm1623_vm0 = vcmp.lt.s32.totalorder %v3147_v52, 4 }
 0x1c3   :  { %v1628_v47 = vsel %vm1620_vm14, %v1607_v23, %v1610_v6  ;;  %v1625_v12 = vsel %vm1623_vm0, %v1613_v31, 2102212464  ;;  %v1629_v30 = vsel %vm1623_vm0, %v1616_v27, 920167782  ;;  %v1632_v60 = vsel %vm1620_vm14, %v1610_v6, %v1613_v31 }
 0x1c4   :  { %v1633_v56 = vsel %vm1623_vm0, %v1619_v38, 1326507024  ;;  %vm1972_vm1 = vcmp.lt.s32.totalorder %v1971_v19, 0  ;;  %vm1621_vm2 = vcmp.lt.s32.totalorder %v3147_v52, 2  ;;  %v1630_v21 = vsel %vm1622_vm15, %v1613_v31, %v1629_v30 }
 0x1c5   :  { %v1634_v55 = vsel %vm1622_vm15, %v1616_v27, %v1633_v56  ;;  %vm1371_vm3 = vcmp.lt.s32.totalorder %v3132_v8, 2  ;;  %v827_v24 = vsel %vm1972_vm1, 0, %v1971_v19  ;;  %v1624_v14 = vsel %vm1620_vm14, %v1604_v2, %v1607_v23 }
 0x1c6   :  { %v1631_v15 = vsel %vm1621_vm2, %v1628_v47, %v1630_v21  ;;  %v1635_v0 = vsel %vm1621_vm2, %v1632_v60, %v1634_v55  ;;  %vm1368_vm4 = vweird.f32 %v2875_v59  ;;  %v828_v49 = vsub.s32 32, %v827_v24 }
 0x1c7   :  { %v832_v29 = vsub.s32 4294967266, %v827_v24  ;;  %v1626_v62 = vsel %vm1622_vm15, %v1610_v6, %v1625_v12  ;;  %v662_v26 = vadd.s32 1, %v1965_v45  ;;  %v829_v42 = vshll.u32 %v3145_v35, %v827_v24 }
 0x1c8   :  { %v3192_v20 = vmul.u32.u64.low %v3143_v54, %v1635_v0  ;;  %v3193_v48 = vmul.u32.u64.high %v3143_v54, %v1635_v0, %v3192_v20  ;;  %v3196_v41 = vmul.u32.u64.low %v3143_v54, %v1631_v15  ;;  %v3197_v25 = vmul.u32.u64.high %v3143_v54, %v1631_v15, %v3196_v41 }
 0x1c9   :  { %v830_v17 = vshrl.u32 %v812_v46, %v828_v49  ;;  %v833_v32 = vadd.s32 127, %v832_v29  ;;  %vm663_vm5 = vcmp.gt.s32.totalorder %v662_v26, 0  ;;  %vm1372_vm6 = vcmp.eq.s32.totalorder %v3132_v8, 0 }
 0x1ca   :  { %v2179_v61 = vpop.eup %2178  ;;  %vm1375_vm7 = vcmp.eq.s32.totalorder %v3132_v8, 2  ;;  %v1627_v51 = vsel %vm1621_vm2, %v1624_v14, %v1626_v62  ;;  %v664_v23 = vsel %vm663_vm5, %v662_v26, 0  ;;  %v660_v31 = vor.u32 8388608, %v3170_v1 }
 0x1cb   :  { %v2181_v4 = vpop.eup %2180  ;;  %v1376_v40 = vxor.u32 2147483648, %v2179_v61  ;;  %v831_v34 = vor.u32 %v830_v17, %v829_v42  ;;  %v834_v6 = vshll.u32 %v833_v32, 23  ;;  %v849_v35 = vadd.s32 3, %v845_v57 }
 0x1cc   :  { %v1373_v27 = vxor.u32 2147483648, %v2181_v4  ;;  %vm1645_vm8 = vc.u32 %v3193_v48, %v3196_v41  ;;  %v1646_v46 = vadd.s32 1, %v3197_v25  ;;  %v1643_v43 = vmul.u32 %v3143_v54, %v1627_v51 }
 0x1cd   :  { %v1377_v44 = vsel %vm1375_vm7, %v1376_v40, %v2181_v4  ;;  %v835_v33 = vor.u32 4788187, %v834_v6  ;;  %v666_v52 = vand.u32 31, %v664_v23  ;;  %v838_v2 = vcvt.s32.f32 %v831_v34 }
 0x1ce   :  { %v1374_v45 = vsel %vm1372_vm6, %v2179_v61, %v1373_v27  ;;  %v1647_v38 = vsel %vm1645_vm8, %v1646_v46, %v3197_v25  ;;  %v3215_v1 = vadd.f32 %v2871_v11, %v2735_v50  ;;  %v3221_v30 = vand.u32 3, %v849_v35 }
 0x1cf   :  { %v1378_v57 = vsel %vm1371_vm3, %v1374_v45, %v1377_v44  ;;  %v836_v19 = vand.u32 2147483647, %v835_v33  ;;  %v1648_v47 = vadd.s32 %v1647_v38, %v1643_v43  ;;  %v667_v12 = vsub.s32 32, %v666_v52 }
 0x1d0   :  { %v1379_v54 = vsel %vm1368_vm4, nan, %v1378_v57  ;;  %v665_v60 = vshrl.u32 %v664_v23, 5  ;;  %v669_v56 = vshll.u32 %v2240_v63, %v666_v52  ;;  %v672_v24 = vshll.u32 %v2241_v3, %v666_v52 }
 0x1d1   :  { %1910 = vst [vmem:[#allocation2 + $0x50] sm:$0xff] %v1379_v54  ;;  %v839_v21 = vmul.f32 %v838_v2, %v836_v19  ;;  %v1649_v55 = vadd.s32 536870912, %v1648_v47  ;;  %v670_v50 = vshrl.u32 %v2241_v3, %v667_v12  ;;  %v673_v8 = vshrl.u32 %v2242_v5, %v667_v12 }
 0x1d2   :  { %v675_v14 = vshll.u32 %v2242_v5, %v666_v52  ;;  %v676_v15 = vshrl.u32 %v2243_v7, %v667_v12  ;;  %v679_v59 = vshrl.u32 %v2244_v9, %v667_v12  ;;  %v678_v62 = vshll.u32 %v2243_v7, %v666_v52 }
 0x1d3   :  { %v840_v0 = vxor.u32 2147483648, %v839_v21  ;;  %v1650_v49 = vshrl.u32 %v1649_v55, 30  ;;  %v671_v29 = vor.u32 %v670_v50, %v669_v56  ;;  %v674_v26 = vor.u32 %v673_v8, %v672_v24 }
 0x1d4   :  { %v677_v20 = vor.u32 %v676_v15, %v675_v14  ;;  %v681_v25 = vshll.u32 %v2244_v9, %v666_v52  ;;  %v682_v42 = vshrl.u32 %v2245_v16, %v667_v12  ;;  %v680_v61 = vor.u32 %v679_v59, %v678_v62 }
 0x1d5   :  { %v841_v17 = vsel %vm758_vm12, %v840_v0, %v839_v21  ;;  %v1651_v32 = vshll.u32 %v1650_v49, 30  ;;  %v3235_v51 = vshll.u32 %v660_v31, 8  ;;  %vm684_vm9 = vcmp.lt.s32.totalorder %v665_v60, 1 }
 0x1d6   :  { %v844_v23 = vsel %vm3136_vm13, %v2879_v36, %v841_v17  ;;  %v683_v4 = vor.u32 %v682_v42, %v681_v25  ;;  %v1487_v40 = vand.u32 2139095040, %v3215_v1  ;;  %vm685_vm10 = vcmp.lt.s32.totalorder %v665_v60, 2 }
 0x1d7   :  { %2182 = vcosq.f32 %v844_v23  ;;  %v3241_v34 = vsub.s32 %v1648_v47, %v1651_v32  ;;  %vm687_vm11 = vcmp.lt.s32.totalorder %v665_v60, 4  ;;  %v668_v6 = vshrl.u32 %v2240_v63, %v667_v12 }
 0x1d8   :  { %2184 = vsinq.f32 %v844_v23  ;;  %v689_v27 = vsel %vm687_vm11, %v677_v20, 2102212464  ;;  %v692_v31 = vsel %vm684_vm9, %v671_v29, %v674_v26  ;;  %v1674_v46 = vsub.s32 4, %v1650_v49 }
 0x1d9   :  { %v1654_v35 = vsub.s32 0, %v3241_v34  ;;  %vm686_vm12 = vcmp.lt.s32.totalorder %v665_v60, 3  ;;  %v693_v58 = vsel %vm687_vm11, %v680_v61, 920167782  ;;  %v688_v44 = vsel %vm684_vm9, %v668_v6, %v671_v29 }
 0x1da   :  { %v694_v33 = vsel %vm686_vm12, %v677_v20, %v693_v58  ;;  %v696_v43 = vsel %vm684_vm9, %v674_v26, %v677_v20  ;;  %v697_v52 = vsel %vm687_vm11, %v683_v4, 1326507024  ;;  %v690_v2 = vsel %vm686_vm12, %v674_v26, %v689_v27 }
 0x1db   :  { %v2002_v45 = vmin.u32 %v1654_v35, %v3241_v34  ;;  %v695_v38 = vsel %vm685_vm10, %v692_v31, %v694_v33  ;;  %v698_v57 = vsel %vm686_vm12, %v680_v61, %v697_v52  ;;  %vm1590_vm13 = vcmp.lt.s32.totalorder %v3051_v39, 0 }
 0x1dc   :  { %v699_v19 = vsel %vm685_vm10, %v696_v43, %v698_v57  ;;  %v3253_v47 = vmul.u32.u64.low %v3235_v51, %v695_v38  ;;  %v3254_v12 = vmul.u32.u64.high %v3235_v51, %v695_v38, %v3253_v47  ;;  %v1675_v56 = vsel %vm1590_vm13, %v1674_v46, %v1650_v49 }
 0x1dd   :  { %v1656_v54 = vclz %v2002_v45  ;;  %v1484_v21 = vand.u32 2147483647, %v3215_v1  ;;  %v691_v55 = vsel %vm685_vm10, %v688_v44, %v690_v2  ;;  %v1488_v8 = vshrl.u32 %v1487_v40, 23 }
 0x1de   :  { %v3261_v50 = vmul.u32.u64.low %v3235_v51, %v699_v19  ;;  %v3262_v24 = vmul.u32.u64.high %v3235_v51, %v699_v19, %v3261_v50  ;;  %vm851_vm14 = vcmp.lt.s32.totalorder %v3221_v30, 2  ;;  %vm3267_vm15 = vcmp.le.f32.partialorder %v1588_v28, 0.7853982 }
 0x1df   :  { %v2003_v15 = vadd.s32 4294967294, %v1656_v54  ;;  %v3273_v59 = vadd.f32 %v2871_v11, %v2861_v53  ;;  %vm852_vm0 = vcmp.eq.s32.totalorder %v3221_v30, 0  ;;  %vm855_vm1 = vcmp.eq.s32.totalorder %v3221_v30, 2 }
 0x1e0   :  { %v710_v60 = vadd.s32 1, %v3254_v12  ;;  %v1997_v0 = vadd.s32 4294967169, %v1488_v8  ;;  %v1644_v29 = vadd.s32 %v3196_v41, %v3193_v48  ;;  %v1677_v28 = vsel %vm3267_vm15, 0, %v1675_v56 }
 0x1e1   :  { %v2183_v49 = vpop.eup %2182  ;;  %vm2004_vm2 = vcmp.lt.s32.totalorder %v2003_v15, 0  ;;  %v707_v62 = vmul.u32 %v3235_v51, %v691_v55  ;;  %vm709_vm3 = vc.u32 %v3262_v24, %v3253_v47  ;;  %v1491_v20 = vand.u32 8388607, %v1484_v21 }
 0x1e2   :  { %v2185_v26 = vpop.eup %2184  ;;  %v856_v53 = vxor.u32 2147483648, %v2183_v49  ;;  %v1659_v11 = vsel %vm2004_vm2, 0, %v2003_v15  ;;  %v967_v32 = vand.u32 2139095040, %v3273_v59  ;;  %v711_v61 = vsel %vm709_vm3, %v710_v60, %v3254_v12 }
 0x1e3   :  { %v853_v25 = vxor.u32 2147483648, %v2185_v26  ;;  %v1660_v42 = vsub.s32 32, %v1659_v11  ;;  %v1664_v17 = vsub.s32 4294967266, %v1659_v11  ;;  %v1661_v41 = vshll.u32 %v3241_v34, %v1659_v11 }
 0x1e4   :  { %v857_v48 = vsel %vm855_vm1, %v856_v53, %v2185_v26  ;;  %v1494_v51 = vadd.s32 1, %v1997_v0  ;;  %v712_v6 = vadd.s32 %v711_v61, %v707_v62  ;;  %vm848_vm4 = vweird.f32 %v2879_v36 }
 0x1e5   :  { %v854_v23 = vsel %vm852_vm0, %v2183_v49, %v853_v25  ;;  %v1662_v4 = vshrl.u32 %v1644_v29, %v1660_v42  ;;  %v1665_v40 = vadd.s32 127, %v1664_v17  ;;  %v1681_v31 = vadd.s32 3, %v1677_v28 }
 0x1e6   :  { %v858_v27 = vsel %vm851_vm14, %v854_v23, %v857_v48  ;;  %vm1495_vm5 = vcmp.gt.s32.totalorder %v1494_v51, 0  ;;  %v713_v34 = vadd.s32 536870912, %v712_v6  ;;  %v1492_v44 = vor.u32 8388608, %v1491_v20 }
 0x1e7   :  { %v859_v35 = vsel %vm848_vm4, nan, %v858_v27  ;;  %v1663_v46 = vor.u32 %v1662_v4, %v1661_v41  ;;  %v1666_v58 = vshll.u32 %v1665_v40, 23  ;;  %v1496_v33 = vsel %vm1495_vm5, %v1494_v51, 0 }
 0x1e8   :  { %1905 = vst [vmem:[#allocation2 + $0x28] sm:$0xff] %v859_v35  ;;  %v714_v52 = vshrl.u32 %v713_v34, 30  ;;  %v968_v45 = vshrl.u32 %v967_v32, 23  ;;  %v1498_v2 = vand.u32 31, %v1496_v33  ;;  %v3296_v19 = vand.u32 3, %v1681_v31 }
 0x1e9   :  { %v1667_v43 = vor.u32 4788187, %v1666_v58  ;;  %v1670_v57 = vcvt.s32.f32 %v1663_v46  ;;  %vm654_vm6 = vcmp.lt.s32.totalorder %v3124_v22, 0  ;;  %v708_v30 = vadd.s32 %v3253_v47, %v3262_v24 }
 0x1ea   :  { %v715_v36 = vshll.u32 %v714_v52, 30  ;;  %v1499_v12 = vsub.s32 32, %v1498_v2  ;;  %v3300_v54 = vshll.u32 %v1492_v44, 8  ;;  %v964_v56 = vand.u32 2147483647, %v3273_v59 }
 0x1eb   :  { %v1668_v38 = vand.u32 2147483647, %v1667_v43  ;;  %v1497_v8 = vshrl.u32 %v1496_v33, 5  ;;  %v1977_v15 = vadd.s32 4294967169, %v968_v45  ;;  %v738_v60 = vsub.s32 4, %v714_v52 }
 0x1ec   :  { %v3303_v50 = vsub.s32 %v712_v6, %v715_v36  ;;  %v1501_v0 = vshll.u32 %v2240_v63, %v1498_v2  ;;  %v1502_v49 = vshrl.u32 %v2241_v3, %v1499_v12  ;;  %v1505_v29 = vshrl.u32 %v2242_v5, %v1499_v12 }
 0x1ed   :  { %v1671_v55 = vmul.f32 %v1670_v57, %v1668_v38  ;;  %vm3310_vm7 = vcmp.le.f32.partialorder %v652_v18, 0.7853982  ;;  %v1504_v62 = vshll.u32 %v2241_v3, %v1498_v2  ;;  %v1508_v26 = vshrl.u32 %v2243_v7, %v1499_v12 }
 0x1ee   :  { %v718_v24 = vsub.s32 0, %v3303_v50  ;;  %v1503_v53 = vor.u32 %v1502_v49, %v1501_v0  ;;  %v1507_v11 = vshll.u32 %v2242_v5, %v1498_v2  ;;  %v1510_v20 = vshll.u32 %v2243_v7, %v1498_v2 }
 0x1ef   :  { %v1672_v28 = vxor.u32 2147483648, %v1671_v55  ;;  %v1511_v25 = vshrl.u32 %v2244_v9, %v1499_v12  ;;  %v1506_v17 = vor.u32 %v1505_v29, %v1504_v62  ;;  %v1513_v32 = vshll.u32 %v2244_v9, %v1498_v2 }
 0x1f0   :  { %v1966_v18 = vmin.u32 %v718_v24, %v3303_v50  ;;  %v1509_v41 = vor.u32 %v1508_v26, %v1507_v11  ;;  %v1514_v51 = vshrl.u32 %v2245_v16, %v1499_v12  ;;  %vm1516_vm8 = vcmp.lt.s32.totalorder %v1497_v8, 1 }
 0x1f1   :  { %v1673_v42 = vsel %vm1590_vm13, %v1672_v28, %v1671_v55  ;;  %v1512_v61 = vor.u32 %v1511_v25, %v1510_v20  ;;  %v974_v4 = vadd.s32 1, %v1977_v15  ;;  %v739_v40 = vsel %vm654_vm6, %v738_v60, %v714_v52 }
 0x1f2   :  { %v1676_v48 = vsel %vm3267_vm15, %v3051_v39, %v1673_v42  ;;  %v720_v23 = vclz %v1966_v18  ;;  %v1500_v6 = vshrl.u32 %v2240_v63, %v1499_v12  ;;  %v1515_v27 = vor.u32 %v1514_v51, %v1513_v32 }
 0x1f3   :  { %2186 = vcosq.f32 %v1676_v48  ;;  %vm1518_vm9 = vcmp.lt.s32.totalorder %v1497_v8, 3  ;;  %vm1519_vm10 = vcmp.lt.s32.totalorder %v1497_v8, 4  ;;  %v1524_v14 = vsel %vm1516_vm8, %v1503_v53, %v1506_v17 }
 0x1f4   :  { %2188 = vsinq.f32 %v1676_v48  ;;  %v1967_v31 = vadd.s32 4294967294, %v720_v23  ;;  %v1521_v35 = vsel %vm1519_vm10, %v1509_v41, 2102212464  ;;  %v1525_v46 = vsel %vm1519_vm10, %v1512_v61, 920167782 }
 0x1f5   :  { %v1528_v58 = vsel %vm1516_vm8, %v1506_v17, %v1509_v41  ;;  %v1529_v34 = vsel %vm1519_vm10, %v1515_v27, 1326507024  ;;  %vm1517_vm12 = vcmp.lt.s32.totalorder %v1497_v8, 2  ;;  %v1526_v44 = vsel %vm1518_vm9, %v1509_v41, %v1525_v46  ;;  %v3366_v23 = vld [vmem:[%s3661_s2] ss:$0 sm:$0xff]  ;;  %s2246_s2 = smov [#allocation2]  }
 0x1f6   :  { %vm1968_vm11 = vcmp.lt.s32.totalorder %v1967_v31, 0  ;;  %v1530_v33 = vsel %vm1518_vm9, %v1512_v61, %v1529_v34  ;;  %v741_v52 = vsel %vm3310_vm7, 0, %v739_v40  ;;  %v1527_v45 = vsel %vm1517_vm12, %v1524_v14, %v1526_v44  ;;  %s1921_s28 = sshll.u32 %s2246_s2, 4  ;;  %s1922_s28 = int_to_ptr.vmem [resolvable:$true] %s1921_s28 }
 0x1f7   :  { %v723_v43 = vsel %vm1968_vm11, 0, %v1967_v31  ;;  %v1531_v2 = vsel %vm1517_vm12, %v1528_v58, %v1530_v33  ;;  %vm1683_vm13 = vcmp.lt.s32.totalorder %v3296_v19, 2  ;;  %v1520_v36 = vsel %vm1516_vm8, %v1500_v6, %v1503_v53  ;;  %s2216_s29 = scalar_lea.vmem %s1922_s28, 2048  ;;  %p2221_p1 = scmp.lt.s32.totalorder %s1922_s28, %s1922_s28 }
 0x1f8   :  { %v724_v38 = vsub.s32 32, %v723_v43  ;;  %v728_v57 = vsub.s32 4294967266, %v723_v43  ;;  %v1522_v12 = vsel %vm1518_vm9, %v1506_v17, %v1521_v35  ;;  %vm1680_vm14 = vweird.f32 %v3051_v39  ;;  %p2217_p0 = scmp.ne.s32.totalorder %s1922_s28, %s2216_s29  ;;  %p2222_p2 = scmp.lt.s32.totalorder %s2216_s29, %s2216_s29 }
 0x1f9   :  { %v3344_v55 = vmul.u32.u64.low %v3300_v54, %v1531_v2  ;;  %v3345_v15 = vmul.u32.u64.high %v3300_v54, %v1531_v2, %v3344_v55  ;;  %v3348_v60 = vmul.u32.u64.low %v3300_v54, %v1527_v45  ;;  %v3349_v0 = vmul.u32.u64.high %v3300_v54, %v1527_v45, %v3348_v60 }
 0x1fa   :  { %v725_v49 = vshll.u32 %v3303_v50, %v723_v43  ;;  %v726_v29 = vshrl.u32 %v708_v30, %v724_v38  ;;  %v729_v28 = vadd.s32 127, %v728_v57  ;;  %vm975_vm15 = vcmp.gt.s32.totalorder %v974_v4, 0  ;;  %p2223_p3 = por %p2222_p2, %p2221_p1 }
 0x1fb   :  { %vm1684_vm0 = vcmp.eq.s32.totalorder %v3296_v19, 0  ;;  %v1523_v24 = vsel %vm1517_vm12, %v1520_v36, %v1522_v12  ;;  %v971_v62 = vand.u32 8388607, %v964_v56  ;;  %v976_v26 = vsel %vm975_vm15, %v974_v4, 0 }
 0x1fc   :  { %vm1687_vm1 = vcmp.eq.s32.totalorder %v3296_v19, 2  ;;  %v727_v11 = vor.u32 %v726_v29, %v725_v49  ;;  %v730_v20 = vshll.u32 %v729_v28, 23  ;;  %v978_v25 = vand.u32 31, %v976_v26  ;;  %p2224_p4 = pnand %p2223_p3, %p2217_p0 }
 0x1fd   :  { %v2187_v53 = vpop.eup %2186  ;;  %v745_v50 = vadd.s32 3, %v741_v52  ;;  %vm1541_vm2 = vc.u32 %v3345_v15, %v3348_v60  ;;  %v1542_v30 = vadd.s32 1, %v3349_v0  ;;  %v1539_v32 = vmul.u32 %v3300_v54, %v1523_v24 }
 0x1fe   :  { %v2189_v42 = vpop.eup %2188  ;;  %v1688_v18 = vxor.u32 2147483648, %v2187_v53  ;;  %v731_v17 = vor.u32 4788187, %v730_v20  ;;  %v979_v48 = vsub.s32 32, %v978_v25  ;;  %v972_v51 = vor.u32 8388608, %v971_v62 }
 0x1ff   :  { %v1685_v8 = vxor.u32 2147483648, %v2189_v42  ;;  %v1543_v61 = vsel %vm1541_vm2, %v1542_v30, %v3349_v0  ;;  %v3370_v4 = vadd.f32 %v3366_v23, %v2909_v13  ;;  %v734_v27 = vcvt.s32.f32 %v727_v11 }
 0x200   :  { %v1689_v41 = vsel %vm1687_vm1, %v1688_v18, %v2189_v42  ;;  %v732_v6 = vand.u32 2147483647, %v731_v17  ;;  %v1544_v54 = vadd.s32 %v1543_v61, %v1539_v32  ;;  %v3376_v14 = vand.u32 3, %v745_v50 }
 0x201   :  { %v1686_v40 = vsel %vm1684_vm0, %v2187_v53, %v1685_v8  ;;  %v982_v35 = vshrl.u32 %v2241_v3, %v979_v48  ;;  %v985_v46 = vshrl.u32 %v2242_v5, %v979_v48  ;;  %v977_v44 = vshrl.u32 %v976_v26, 5 }
 0x202   :  { %v1690_v31 = vsel %vm1683_vm13, %v1686_v40, %v1689_v41  ;;  %v735_v13 = vmul.f32 %v734_v27, %v732_v6  ;;  %v1545_v34 = vadd.s32 536870912, %v1544_v54  ;;  %vm1486_vm3 = vcmp.lt.s32.totalorder %v3215_v1, 0 }
 0x203   :  { %v1691_v58 = vsel %vm1680_vm14, nan, %v1690_v31  ;;  %v981_v33 = vshll.u32 %v2240_v63, %v978_v25  ;;  %v984_v19 = vshll.u32 %v2241_v3, %v978_v25  ;;  %v988_v43 = vshrl.u32 %v2243_v7, %v979_v48 }
 0x204   :  { %1913 = vst [vmem:[#allocation2 + $0x68] sm:$0xff] %v1691_v58  ;;  %v991_v52 = vshrl.u32 %v2244_v9, %v979_v48  ;;  %v736_v45 = vxor.u32 2147483648, %v735_v13  ;;  %v1546_v2 = vshrl.u32 %v1545_v34, 30  ;;  %v987_v38 = vshll.u32 %v2242_v5, %v978_v25 }
 0x205   :  { %v990_v39 = vshll.u32 %v2243_v7, %v978_v25  ;;  %v983_v57 = vor.u32 %v982_v35, %v981_v33  ;;  %v986_v36 = vor.u32 %v985_v46, %v984_v19  ;;  %v993_v12 = vshll.u32 %v2244_v9, %v978_v25 }
 0x206   :  { %v994_v55 = vshrl.u32 %v2245_v16, %v979_v48  ;;  %v737_v0 = vsel %vm654_vm6, %v736_v45, %v735_v13  ;;  %v1547_v49 = vshll.u32 %v1546_v2, 30  ;;  %v3393_v28 = vshll.u32 %v972_v51, 8 }
 0x207   :  { %v992_v29 = vor.u32 %v991_v52, %v990_v39  ;;  %v740_v24 = vsel %vm3310_vm7, %v3124_v22, %v737_v0  ;;  %v989_v62 = vor.u32 %v988_v43, %v987_v38  ;;  %v1799_v53 = vand.u32 2139095040, %v3370_v4 }
 0x208   :  { %v995_v26 = vor.u32 %v994_v55, %v993_v12  ;;  %2190 = vcosq.f32 %v740_v24  ;;  %v3399_v11 = vsub.s32 %v1544_v54, %v1547_v49  ;;  %v1570_v20 = vsub.s32 4, %v1546_v2 }
 0x209   :  { %vm996_vm4 = vcmp.lt.s32.totalorder %v977_v44, 1  ;;  %2192 = vsinq.f32 %v740_v24  ;;  %v980_v25 = vshrl.u32 %v2240_v63, %v979_v48  ;;  %vm999_vm5 = vcmp.lt.s32.totalorder %v977_v44, 4 }
 0x20a   :  { %v1004_v42 = vsel %vm996_vm4, %v983_v57, %v986_v36  ;;  %v1550_v18 = vsub.s32 0, %v3399_v11  ;;  %vm997_vm6 = vcmp.lt.s32.totalorder %v977_v44, 2  ;;  %vm998_vm8 = vcmp.lt.s32.totalorder %v977_v44, 3 }
 0x20b   :  { %v1005_v47 = vsel %vm999_vm5, %v992_v29, 920167782  ;;  %v1001_v50 = vsel %vm999_vm5, %v989_v62, 2102212464  ;;  %v1008_v8 = vsel %vm996_vm4, %v986_v36, %v989_v62  ;;  %v1009_v17 = vsel %vm999_vm5, %v995_v26, 1326507024 }
 0x20c   :  { %v1006_v30 = vsel %vm998_vm8, %v989_v62, %v1005_v47  ;;  %v1998_v32 = vmin.u32 %v1550_v18, %v3399_v11  ;;  %v1571_v41 = vsel %vm1486_vm3, %v1570_v20, %v1546_v2  ;;  %v1010_v61 = vsel %vm998_vm8, %v992_v29, %v1009_v17 }
 0x20d   :  { %v1007_v48 = vsel %vm997_vm6, %v1004_v42, %v1006_v30  ;;  %v1011_v51 = vsel %vm997_vm6, %v1008_v8, %v1010_v61  ;;  %v1800_v27 = vshrl.u32 %v1799_v53, 23  ;;  %v1000_v31 = vsel %vm996_vm4, %v980_v25, %v983_v57 }
 0x20e   :  { %v3411_v40 = vmul.u32.u64.low %v3393_v28, %v1007_v48  ;;  %v3412_v6 = vmul.u32.u64.high %v3393_v28, %v1007_v48, %v3411_v40  ;;  %v1552_v54 = vclz %v1998_v32  ;;  %v1002_v35 = vsel %vm998_vm8, %v986_v36, %v1001_v50 }
 0x20f   :  { %vm744_vm7 = vweird.f32 %v3124_v22  ;;  %vm3418_vm9 = vcmp.le.f32.partialorder %v1484_v21, 0.7853982  ;;  %v3423_v58 = vmul.u32.u64.low %v3393_v28, %v1011_v51  ;;  %v3424_v13 = vmul.u32.u64.high %v3393_v28, %v1011_v51, %v3423_v58 }
 0x210   :  { %v2009_v34 = vadd.s32 4294967169, %v1800_v27  ;;  %v1999_v33 = vadd.s32 4294967294, %v1552_v54  ;;  %v1573_v19 = vsel %vm3418_vm9, 0, %v1571_v41  ;;  %v1796_v43 = vand.u32 2147483647, %v3370_v4 }
 0x211   :  { %v3431_v52 = vadd.f32 %v3366_v23, %v3001_v37  ;;  %vm747_vm10 = vcmp.lt.s32.totalorder %v3376_v14, 2  ;;  %v1003_v21 = vsel %vm997_vm6, %v1000_v31, %v1002_v35  ;;  %v1022_v45 = vadd.s32 1, %v3412_v6 }
 0x212   :  { %v1806_v2 = vadd.s32 1, %v2009_v34  ;;  %v2191_v38 = vpop.eup %2190  ;;  %vm748_vm11 = vcmp.eq.s32.totalorder %v3376_v14, 0  ;;  %vm751_vm12 = vcmp.eq.s32.totalorder %v3376_v14, 2  ;;  %v1540_v39 = vadd.s32 %v3348_v60, %v3345_v15 }
 0x213   :  { %vm2000_vm13 = vcmp.lt.s32.totalorder %v1999_v33, 0  ;;  %v2193_v57 = vpop.eup %2192  ;;  %v752_v36 = vxor.u32 2147483648, %v2191_v38  ;;  %v1577_v12 = vadd.s32 3, %v1573_v19  ;;  %vm1021_vm14 = vc.u32 %v3424_v13, %v3411_v40 }
 0x214   :  { %v1555_v37 = vsel %vm2000_vm13, 0, %v1999_v33  ;;  %v749_v44 = vxor.u32 2147483648, %v2193_v57  ;;  %v1019_v49 = vmul.u32 %v3393_v28, %v1003_v21  ;;  %v1023_v62 = vsel %vm1021_vm14, %v1022_v45, %v3412_v6 }
 0x215   :  { %v1556_v55 = vsub.s32 32, %v1555_v37  ;;  %v1560_v0 = vsub.s32 4294967266, %v1555_v37  ;;  %v753_v29 = vsel %vm751_vm12, %v752_v36, %v2193_v57  ;;  %v1557_v24 = vshll.u32 %v3399_v11, %v1555_v37 }
 0x216   :  { %vm1807_vm15 = vcmp.gt.s32.totalorder %v1806_v2, 0  ;;  %v750_v15 = vsel %vm748_vm11, %v2191_v38, %v749_v44  ;;  %v1024_v53 = vadd.s32 %v1023_v62, %v1019_v49  ;;  %v1803_v25 = vand.u32 8388607, %v1796_v43 }
 0x217   :  { %v1558_v60 = vshrl.u32 %v1540_v39, %v1556_v55  ;;  %v1561_v26 = vadd.s32 127, %v1560_v0  ;;  %v754_v20 = vsel %vm747_vm10, %v750_v15, %v753_v29  ;;  %v1808_v42 = vsel %vm1807_vm15, %v1806_v2, 0 }
 0x218   :  { %v860_v28 = vand.u32 2147483647, %v3431_v52  ;;  %v755_v11 = vsel %vm744_vm7, nan, %v754_v20  ;;  %v1025_v50 = vadd.s32 536870912, %v1024_v53  ;;  %v1810_v30 = vand.u32 31, %v1808_v42 }
 0x219   :  { %v1559_v18 = vor.u32 %v1558_v60, %v1557_v24  ;;  %v1562_v47 = vshll.u32 %v1561_v26, 23  ;;  %1904 = vst [vmem:[#allocation2 + $0x20] sm:$0xff] %v755_v11  ;;  %v3455_v32 = vand.u32 3, %v1577_v12  ;;  %v1804_v14 = vor.u32 8388608, %v1803_v25 }
 0x21a   :  { %v3453_v17 = vshrl.u32 %v1025_v50, 30  ;;  %v1811_v41 = vsub.s32 32, %v1810_v30  ;;  %v863_v48 = vand.u32 2139095040, %v3431_v52  ;;  %v3461_v22 = vand.u32 8388607, %v860_v28 }
 0x21b   :  { %v1563_v8 = vor.u32 4788187, %v1562_v47  ;;  %v1566_v51 = vcvt.s32.f32 %v1559_v18  ;;  %v1020_v27 = vadd.s32 %v3411_v40, %v3424_v13  ;;  %v1813_v33 = vshll.u32 %v2240_v63, %v1810_v30 }
 0x21c   :  { %v1027_v6 = vshll.u32 %v3453_v17, 30  ;;  %v1814_v54 = vshrl.u32 %v2241_v3, %v1811_v41  ;;  %v1817_v31 = vshrl.u32 %v2242_v5, %v1811_v41  ;;  %v1820_v35 = vshrl.u32 %v2243_v7, %v1811_v41 }
 0x21d   :  { %v1564_v61 = vand.u32 2147483647, %v1563_v8  ;;  %v1823_v19 = vshrl.u32 %v2244_v9, %v1811_v41  ;;  %v1809_v21 = vshrl.u32 %v1808_v42, 5  ;;  %v1816_v45 = vshll.u32 %v2241_v3, %v1810_v30 }
 0x21e   :  { %v3467_v34 = vsub.s32 %v1024_v53, %v1027_v6  ;;  %v1819_v2 = vshll.u32 %v2242_v5, %v1810_v30  ;;  %v864_v38 = vshrl.u32 %v863_v48, 23  ;;  %v1815_v39 = vor.u32 %v1814_v54, %v1813_v33 }
 0x21f   :  { %v1567_v58 = vmul.f32 %v1566_v51, %v1564_v61  ;;  %v1822_v57 = vshll.u32 %v2243_v7, %v1810_v30  ;;  %v1818_v36 = vor.u32 %v1817_v31, %v1816_v45  ;;  %v1825_v12 = vshll.u32 %v2244_v9, %v1810_v30 }
 0x220   :  { %v1030_v13 = vsub.s32 0, %v3467_v34  ;;  %v1821_v37 = vor.u32 %v1820_v35, %v1819_v2  ;;  %v1826_v44 = vshrl.u32 %v2245_v16, %v1811_v41  ;;  %v3480_v29 = vshll.u32 %v1804_v14, 8 }
 0x221   :  { %v1568_v40 = vxor.u32 2147483648, %v1567_v58  ;;  %v1824_v49 = vor.u32 %v1823_v19, %v1822_v57  ;;  %v1812_v62 = vshrl.u32 %v2240_v63, %v1811_v41  ;;  %v1973_v60 = vadd.s32 4294967169, %v864_v38 }
 0x222   :  { %v1978_v0 = vmin.u32 %v1030_v13, %v3467_v34  ;;  %v1827_v15 = vor.u32 %v1826_v44, %v1825_v12  ;;  %vm1828_vm0 = vcmp.lt.s32.totalorder %v1809_v21, 1  ;;  %vm1831_vm1 = vcmp.lt.s32.totalorder %v1809_v21, 4 }
 0x223   :  { %v1569_v55 = vsel %vm1486_vm3, %v1568_v40, %v1567_v58  ;;  %vm966_vm2 = vcmp.lt.s32.totalorder %v3273_v59, 0  ;;  %vm1829_vm3 = vcmp.lt.s32.totalorder %v1809_v21, 2  ;;  %v1833_v53 = vsel %vm1831_vm1, %v1821_v37, 2102212464 }
 0x224   :  { %v1572_v24 = vsel %vm3418_vm9, %v3215_v1, %v1569_v55  ;;  %v1032_v26 = vclz %v1978_v0  ;;  %v1836_v20 = vsel %vm1828_vm0, %v1815_v39, %v1818_v36  ;;  %vm1830_vm4 = vcmp.lt.s32.totalorder %v1809_v21, 3 }
 0x225   :  { %2194 = vcosq.f32 %v1572_v24  ;;  %v1837_v42 = vsel %vm1831_vm1, %v1824_v49, 920167782  ;;  %v1840_v11 = vsel %vm1828_vm0, %v1818_v36, %v1821_v37  ;;  %v1832_v46 = vsel %vm1828_vm0, %v1812_v62, %v1815_v39 }
 0x226   :  { %2196 = vsinq.f32 %v1572_v24  ;;  %v1979_v25 = vadd.s32 4294967294, %v1032_v26  ;;  %v1838_v18 = vsel %vm1830_vm4, %v1821_v37, %v1837_v42  ;;  %v1841_v47 = vsel %vm1831_vm1, %v1827_v15, 1326507024 }
 0x227   :  { %v870_v50 = vadd.s32 1, %v1973_v60  ;;  %v1834_v30 = vsel %vm1830_vm4, %v1818_v36, %v1833_v53  ;;  %v1839_v8 = vsel %vm1829_vm3, %v1836_v20, %v1838_v18  ;;  %v1842_v14 = vsel %vm1830_vm4, %v1824_v49, %v1841_v47 }
 0x228   :  { %vm1980_vm5 = vcmp.lt.s32.totalorder %v1979_v25, 0  ;;  %v1843_v48 = vsel %vm1829_vm3, %v1840_v11, %v1842_v14  ;;  %v3490_v61 = vmul.u32.u64.low %v3480_v29, %v1839_v8  ;;  %v3491_v51 = vmul.u32.u64.high %v3480_v29, %v1839_v8, %v3490_v61 }
 0x229   :  { %v1035_v41 = vsel %vm1980_vm5, 0, %v1979_v25  ;;  %v1050_v31 = vsub.s32 4, %v3453_v17  ;;  %vm871_vm6 = vcmp.gt.s32.totalorder %v870_v50, 0  ;;  %vm1576_vm8 = vweird.f32 %v3215_v1 }
 0x22a   :  { %v1036_v6 = vsub.s32 32, %v1035_v41  ;;  %v1040_v54 = vsub.s32 4294967266, %v1035_v41  ;;  %v1835_v35 = vsel %vm1829_vm3, %v1832_v46, %v1834_v30  ;;  %v872_v19 = vsel %vm871_vm6, %v870_v50, 0 }
 0x22b   :  { %v3498_v58 = vmul.u32.u64.low %v3480_v29, %v1843_v48  ;;  %v3499_v33 = vmul.u32.u64.high %v3480_v29, %v1843_v48, %v3498_v58  ;;  %v1037_v45 = vshll.u32 %v3467_v34, %v1035_v41  ;;  %v874_v40 = vand.u32 31, %v872_v19 }
 0x22c   :  { %v1038_v2 = vshrl.u32 %v1020_v27, %v1036_v6  ;;  %v1041_v38 = vadd.s32 127, %v1040_v54  ;;  %vm1579_vm7 = vcmp.lt.s32.totalorder %v3455_v32, 2  ;;  %vm1580_vm9 = vcmp.eq.s32.totalorder %v3455_v32, 0 }
 0x22d   :  { %vm3506_vm10 = vcmp.le.f32.partialorder %v964_v56, 0.7853982  ;;  %v1854_v21 = vadd.s32 1, %v3491_v51  ;;  %vm1583_vm11 = vcmp.eq.s32.totalorder %v3455_v32, 2  ;;  %v1051_v27 = vsel %vm966_vm2, %v1050_v31, %v3453_v17 }
 0x22e   :  { %v1039_v57 = vor.u32 %v1038_v2, %v1037_v45  ;;  %v1042_v34 = vshll.u32 %v1041_v38, 23  ;;  %v1851_v12 = vmul.u32 %v3480_v29, %v1835_v35  ;;  %vm1853_vm12 = vc.u32 %v3499_v33, %v3490_v61 }
 0x22f   :  { %v2195_v39 = vpop.eup %2194  ;;  %v875_v56 = vsub.s32 32, %v874_v40  ;;  %v1855_v0 = vsel %vm1853_vm12, %v1854_v21, %v3491_v51  ;;  %v868_v49 = vor.u32 8388608, %v3461_v22  ;;  %v1053_v62 = vsel %vm3506_vm10, 0, %v1051_v27 }
 0x230   :  { %v2197_v36 = vpop.eup %2196  ;;  %v1584_v37 = vxor.u32 2147483648, %v2195_v39  ;;  %v1043_v55 = vor.u32 4788187, %v1042_v34  ;;  %v1856_v15 = vadd.s32 %v1855_v0, %v1851_v12  ;;  %v3524_v17 = vadd.f32 %v3366_v23, %v3082_v10 }
 0x231   :  { %v1581_v44 = vxor.u32 2147483648, %v2197_v36  ;;  %v1046_v26 = vcvt.s32.f32 %v1039_v57  ;;  %v873_v53 = vshrl.u32 %v872_v19, 5  ;;  %v878_v22 = vshrl.u32 %v2241_v3, %v875_v56 }
 0x232   :  { %v1585_v24 = vsel %vm1583_vm11, %v1584_v37, %v2197_v36  ;;  %v1044_v60 = vand.u32 2147483647, %v1043_v55  ;;  %v1857_v25 = vadd.s32 536870912, %v1856_v15  ;;  %v881_v42 = vshrl.u32 %v2242_v5, %v875_v56 }
 0x233   :  { %v1582_v29 = vsel %vm1580_vm9, %v2195_v39, %v1581_v44  ;;  %v877_v10 = vshll.u32 %v2240_v63, %v874_v40  ;;  %v884_v23 = vshrl.u32 %v2243_v7, %v875_v56  ;;  %v880_v47 = vshll.u32 %v2241_v3, %v874_v40 }
 0x234   :  { %v1586_v20 = vsel %vm1579_vm7, %v1582_v29, %v1585_v24  ;;  %v1047_v46 = vmul.f32 %v1046_v26, %v1044_v60  ;;  %v3536_v18 = vshrl.u32 %v1857_v25, 30  ;;  %v883_v32 = vshll.u32 %v2242_v5, %v874_v40 }
 0x235   :  { %v1587_v11 = vsel %vm1576_vm8, nan, %v1586_v20  ;;  %v887_v50 = vshrl.u32 %v2244_v9, %v875_v56  ;;  %v886_v8 = vshll.u32 %v2243_v7, %v874_v40  ;;  %v889_v1 = vshll.u32 %v2244_v9, %v874_v40 }
 0x236   :  { %1912 = vst [vmem:[#allocation2 + $0x60] sm:$0xff] %v1587_v11  ;;  %v1048_v30 = vxor.u32 2147483648, %v1047_v46  ;;  %v890_v14 = vshrl.u32 %v2245_v16, %v875_v56  ;;  %v1859_v41 = vshll.u32 %v3536_v18, 30  ;;  %v879_v48 = vor.u32 %v878_v22, %v877_v10 }
 0x237   :  { %v882_v51 = vor.u32 %v881_v42, %v880_v47  ;;  %v3545_v6 = vshll.u32 %v868_v49, 8  ;;  %v885_v31 = vor.u32 %v884_v23, %v883_v32  ;;  %v888_v35 = vor.u32 %v887_v50, %v886_v8 }
 0x238   :  { %v1049_v54 = vsel %vm966_vm2, %v1048_v30, %v1047_v46  ;;  %v891_v58 = vor.u32 %v890_v14, %v889_v1  ;;  %v1057_v45 = vadd.s32 3, %v1053_v62  ;;  %v1860_v2 = vsub.s32 %v1856_v15, %v1859_v41 }
 0x239   :  { %v1052_v19 = vsel %vm3506_vm10, %v3273_v59, %v1049_v54  ;;  %v1695_v38 = vand.u32 2139095040, %v3524_v17  ;;  %v876_v40 = vshrl.u32 %v2240_v63, %v875_v56  ;;  %vm892_vm13 = vcmp.lt.s32.totalorder %v873_v53, 1 }
 0x23a   :  { %2198 = vcosq.f32 %v1052_v19  ;;  %vm894_vm14 = vcmp.lt.s32.totalorder %v873_v53, 3  ;;  %v1862_v21 = vsub.s32 0, %v1860_v2  ;;  %vm895_vm15 = vcmp.lt.s32.totalorder %v873_v53, 4 }
 0x23b   :  { %2200 = vsinq.f32 %v1052_v19  ;;  %v900_v39 = vsel %vm892_vm13, %v879_v48, %v882_v51  ;;  %v897_v57 = vsel %vm895_vm15, %v885_v31, 2102212464  ;;  %v901_v34 = vsel %vm895_vm15, %v888_v35, 920167782 }
 0x23c   :  { %v904_v27 = vsel %vm892_vm13, %v882_v51, %v885_v31  ;;  %v905_v13 = vsel %vm895_vm15, %v891_v58, 1326507024  ;;  %v2010_v36 = vmin.u32 %v1862_v21, %v1860_v2  ;;  %vm893_vm0 = vcmp.lt.s32.totalorder %v873_v53, 2 }
 0x23d   :  { %v902_v37 = vsel %vm894_vm14, %v885_v31, %v901_v34  ;;  %v906_v12 = vsel %vm894_vm14, %v888_v35, %v905_v13  ;;  %v1058_v44 = vand.u32 3, %v1057_v45  ;;  %v1696_v0 = vshrl.u32 %v1695_v38, 23 }
 0x23e   :  { %v903_v56 = vsel %vm893_vm0, %v900_v39, %v902_v37  ;;  %v907_v55 = vsel %vm893_vm0, %v904_v27, %v906_v12  ;;  %v1864_v49 = vclz %v2010_v36  ;;  %v896_v24 = vsel %vm892_vm13, %v876_v40, %v879_v48 }
 0x23f   :  { %v898_v62 = vsel %vm894_vm14, %v882_v51, %v897_v57  ;;  %v3563_v15 = vmul.u32.u64.low %v3545_v6, %v907_v55  ;;  %v3564_v29 = vmul.u32.u64.high %v3545_v6, %v907_v55, %v3563_v15  ;;  %v2005_v25 = vadd.s32 4294967169, %v1696_v0 }
 0x240   :  { %v3567_v60 = vmul.u32.u64.low %v3545_v6, %v903_v56  ;;  %v3568_v26 = vmul.u32.u64.high %v3545_v6, %v903_v56, %v3567_v60  ;;  %v2011_v20 = vadd.s32 4294967294, %v1864_v49  ;;  %vm1056_vm1 = vweird.f32 %v3273_v59 }
 0x241   :  { %vm1060_vm2 = vcmp.eq.s32.totalorder %v1058_v44, 0  ;;  %v899_v22 = vsel %vm893_vm0, %v896_v24, %v898_v62  ;;  %vm1063_vm3 = vcmp.eq.s32.totalorder %v1058_v44, 2  ;;  %v1852_v42 = vadd.s32 %v3490_v61, %v3499_v33 }
 0x242   :  { %vm2012_vm4 = vcmp.lt.s32.totalorder %v2011_v20, 0  ;;  %v1702_v11 = vadd.s32 1, %v2005_v25  ;;  %v1882_v23 = vsub.s32 4, %v3536_v18  ;;  %vm917_vm5 = vc.u32 %v3564_v29, %v3567_v60 }
 0x243   :  { %v1867_v10 = vsel %vm2012_vm4, 0, %v2011_v20  ;;  %v918_v47 = vadd.s32 1, %v3568_v26  ;;  %v915_v8 = vmul.u32 %v3545_v6, %v899_v22  ;;  %vm1059_vm8 = vcmp.lt.s32.totalorder %v1058_v44, 2 }
 0x244   :  { %v2199_v46 = vpop.eup %2198  ;;  %v1868_v30 = vsub.s32 32, %v1867_v10  ;;  %v1872_v53 = vsub.s32 4294967266, %v1867_v10  ;;  %v1869_v14 = vshll.u32 %v1860_v2, %v1867_v10  ;;  %vm1703_vm6 = vcmp.gt.s32.totalorder %v1702_v11, 0 }
 0x245   :  { %v2201_v32 = vpop.eup %2200  ;;  %v1064_v50 = vxor.u32 2147483648, %v2199_v46  ;;  %v919_v61 = vsel %vm917_vm5, %v918_v47, %v3568_v26  ;;  %v1692_v31 = vand.u32 2147483647, %v3524_v17  ;;  %v1704_v35 = vsel %vm1703_vm6, %v1702_v11, 0 }
 0x246   :  { %v1061_v1 = vxor.u32 2147483648, %v2201_v32  ;;  %v1870_v41 = vshrl.u32 %v1852_v42, %v1868_v30  ;;  %v1873_v48 = vadd.s32 127, %v1872_v53  ;;  %v920_v51 = vadd.s32 %v919_v61, %v915_v8 }
 0x247   :  { %v1065_v33 = vsel %vm1063_vm3, %v1064_v50, %v2201_v32  ;;  %vm1798_vm7 = vcmp.lt.s32.totalorder %v3370_v4, 0  ;;  %v1706_v38 = vand.u32 31, %v1704_v35  ;;  %v1699_v57 = vand.u32 8388607, %v1692_v31 }
 0x248   :  { %v1062_v54 = vsel %vm1060_vm2, %v2199_v46, %v1061_v1  ;;  %v1871_v19 = vor.u32 %v1870_v41, %v1869_v14  ;;  %v1874_v45 = vshll.u32 %v1873_v48, 23  ;;  %v921_v6 = vadd.s32 536870912, %v920_v51 }
 0x249   :  { %v1066_v58 = vsel %vm1059_vm8, %v1062_v54, %v1065_v33  ;;  %v1883_v21 = vsel %vm1798_vm7, %v1882_v23, %v3536_v18  ;;  %v1707_v34 = vsub.s32 32, %v1706_v38  ;;  %vm3596_vm9 = vcmp.le.f32.partialorder %v1796_v43, 0.7853982 }
 0x24a   :  { %v1067_v2 = vsel %vm1056_vm1, nan, %v1066_v58  ;;  %v1875_v40 = vor.u32 4788187, %v1874_v45  ;;  %v3590_v39 = vshrl.u32 %v921_v6, 30  ;;  %v1878_v13 = vcvt.s32.f32 %v1871_v19 }
 0x24b   :  { %1907 = vst [vmem:[#allocation2 + $0x38] sm:$0xff] %v1067_v2  ;;  %v1885_v37 = vsel %vm3596_vm9, 0, %v1883_v21  ;;  %v1710_v18 = vshrl.u32 %v2241_v3, %v1707_v34  ;;  %v1713_v12 = vshrl.u32 %v2242_v5, %v1707_v34  ;;  %v1716_v44 = vshrl.u32 %v2243_v7, %v1707_v34 }
 0x24c   :  { %v1876_v27 = vand.u32 2147483647, %v1875_v40  ;;  %v923_v36 = vshll.u32 %v3590_v39, 30  ;;  %v1709_v43 = vshll.u32 %v2240_v63, %v1706_v38  ;;  %v1719_v0 = vshrl.u32 %v2244_v9, %v1707_v34 }
 0x24d   :  { %v1700_v49 = vor.u32 8388608, %v1699_v57  ;;  %v1705_v24 = vshrl.u32 %v1704_v35, 5  ;;  %v1712_v62 = vshll.u32 %v2241_v3, %v1706_v38  ;;  %v1715_v15 = vshll.u32 %v2242_v5, %v1706_v38 }
 0x24e   :  { %v1879_v56 = vmul.f32 %v1878_v13, %v1876_v27  ;;  %v924_v55 = vsub.s32 %v920_v51, %v923_v36  ;;  %v1711_v25 = vor.u32 %v1710_v18, %v1709_v43  ;;  %v1718_v22 = vshll.u32 %v2243_v7, %v1706_v38 }
 0x24f   :  { %v1714_v42 = vor.u32 %v1713_v12, %v1712_v62  ;;  %v1717_v11 = vor.u32 %v1716_v44, %v1715_v15  ;;  %v1721_v46 = vshll.u32 %v2244_v9, %v1706_v38  ;;  %v1722_v10 = vshrl.u32 %v2245_v16, %v1707_v34 }
 0x250   :  { %v1880_v26 = vxor.u32 2147483648, %v1879_v56  ;;  %v926_v20 = vsub.s32 0, %v924_v55  ;;  %v1720_v32 = vor.u32 %v1719_v0, %v1718_v22  ;;  %v1889_v5 = vadd.s32 3, %v1885_v37 }
 0x251   :  { %v1723_v50 = vor.u32 %v1722_v10, %v1721_v46  ;;  %v1740_v30 = vshll.u32 %v1700_v49, 8  ;;  %vm1724_vm10 = vcmp.lt.s32.totalorder %v1705_v24, 1  ;;  %vm1727_vm11 = vcmp.lt.s32.totalorder %v1705_v24, 4 }
 0x252   :  { %v1881_v23 = vsel %vm1798_vm7, %v1880_v26, %v1879_v56  ;;  %v1974_v47 = vmin.u32 %v926_v20, %v924_v55  ;;  %v1708_v9 = vshrl.u32 %v2240_v63, %v1707_v34  ;;  %v1729_v16 = vsel %vm1727_vm11, %v1717_v11, 2102212464 }
 0x253   :  { %v1884_v3 = vsel %vm3596_vm9, %v3370_v4, %v1881_v23  ;;  %v1732_v53 = vsel %vm1724_vm10, %v1711_v25, %v1714_v42  ;;  %vm1726_vm12 = vcmp.lt.s32.totalorder %v1705_v24, 3  ;;  %v1733_v1 = vsel %vm1727_vm11, %v1720_v32, 920167782 }
 0x254   :  { %2202 = vcosq.f32 %v1884_v3  ;;  %v928_v7 = vclz %v1974_v47  ;;  %v1736_v14 = vsel %vm1724_vm10, %v1714_v42, %v1717_v11  ;;  %vm1725_vm13 = vcmp.lt.s32.totalorder %v1705_v24, 2 }
 0x255   :  { %2204 = vsinq.f32 %v1884_v3  ;;  %v1728_v61 = vsel %vm1724_vm10, %v1708_v9, %v1711_v25  ;;  %v1734_v33 = vsel %vm1726_vm12, %v1717_v11, %v1733_v1  ;;  %v1737_v41 = vsel %vm1727_vm11, %v1723_v50, 1326507024 }
 0x256   :  { %v1975_v8 = vadd.s32 4294967294, %v928_v7  ;;  %v1730_v48 = vsel %vm1726_vm12, %v1714_v42, %v1729_v16  ;;  %v1735_v51 = vsel %vm1725_vm13, %v1732_v53, %v1734_v33  ;;  %v1738_v54 = vsel %vm1726_vm12, %v1720_v32, %v1737_v41 }
 0x257   :  { %v1739_v58 = vsel %vm1725_vm13, %v1736_v14, %v1738_v54  ;;  %v3621_v19 = vmul.u32.u64.low %v1740_v30, %v1735_v51  ;;  %v3622_v63 = vmul.u32.u64.high %v1740_v30, %v1735_v51, %v3621_v19  ;;  %v916_v45 = vadd.s32 %v3567_v60, %v3564_v29 }
 0x258   :  { %vm1976_vm14 = vcmp.lt.s32.totalorder %v1975_v8, 0  ;;  %v1890_v38 = vand.u32 3, %v1889_v5  ;;  %v3626_v40 = vmul.u32.u64.low %v1740_v30, %v1739_v58  ;;  %v3627_v21 = vmul.u32.u64.high %v1740_v30, %v1739_v58, %v3626_v40 }
 0x259   :  { %v931_v35 = vsel %vm1976_vm14, 0, %v1975_v8  ;;  %v1731_v27 = vsel %vm1725_vm13, %v1728_v61, %v1730_v48  ;;  %v1750_v13 = vadd.s32 1, %v3622_v63  ;;  %vm1888_vm3 = vweird.f32 %v3370_v4 }
 0x25a   :  { %v932_v6 = vsub.s32 32, %v931_v35  ;;  %v936_v2 = vsub.s32 4294967266, %v931_v35  ;;  %v933_v57 = vshll.u32 %v924_v55, %v931_v35  ;;  %v1747_v56 = vmul.u32 %v1740_v30, %v1731_v27 }
 0x25b   :  { %vm1749_vm15 = vc.u32 %v3627_v21, %v3621_v19  ;;  %vm1895_vm0 = vcmp.eq.s32.totalorder %v1890_v38, 2  ;;  %vm1892_vm1 = vcmp.eq.s32.totalorder %v1890_v38, 0  ;;  %vm1891_vm2 = vcmp.lt.s32.totalorder %v1890_v38, 2 }
 0x25c   :  { %v934_v34 = vshrl.u32 %v916_v45, %v932_v6  ;;  %v937_v59 = vadd.s32 127, %v936_v2  ;;  %v1751_v43 = vsel %vm1749_vm15, %v1750_v13, %v3622_v63  ;;  %v946_v22 = vsub.s32 4, %v3590_v39 }
 0x25d   :  { %v1752_v0 = vadd.s32 %v1751_v43, %v1747_v56  ;;  %vm862_vm4 = vcmp.lt.s32.totalorder %v3431_v52, 0  ;;  %vm861_vm5 = vcmp.le.f32.partialorder %v860_v28, 0.7853982  ;;  %v1748_v1 = vadd.s32 %v3621_v19, %v3627_v21 }
 0x25e   :  { %v2203_v36 = vpop.eup %2202  ;;  %v935_v37 = vor.u32 %v934_v34, %v933_v57  ;;  %v938_v18 = vshll.u32 %v937_v59, 23  ;;  %v947_v23 = vsel %vm862_vm4, %v946_v22, %v3590_v39  ;;  %vm952_vm10 = vweird.f32 %v3431_v52 }
 0x25f   :  { %v2205_v12 = vpop.eup %2204  ;;  %v1896_v44 = vxor.u32 2147483648, %v2203_v36  ;;  %v1753_v26 = vadd.s32 536870912, %v1752_v0  ;;  %v949_v32 = vsel %vm861_vm5, 0, %v947_v23  ;;  %vm1694_vm11 = vcmp.lt.s32.totalorder %v3524_v17, 0 }
 0x260   :  { %v1893_v29 = vxor.u32 2147483648, %v2205_v12  ;;  %v939_v60 = vor.u32 4788187, %v938_v18  ;;  %v942_v62 = vcvt.s32.f32 %v935_v37  ;;  %v953_v50 = vadd.s32 3, %v949_v32 }
 0x261   :  { %v1897_v55 = vsel %vm1895_vm0, %v1896_v44, %v2205_v12  ;;  %v1754_v42 = vshrl.u32 %v1753_v26, 30  ;;  %vm1693_vm12 = vcmp.le.f32.partialorder %v1692_v31, 0.7853982  ;;  %vm1784_vm0 = vweird.f32 %v3524_v17 }
 0x262   :  { %v1894_v49 = vsel %vm1892_vm1, %v2203_v36, %v1893_v29  ;;  %v940_v24 = vand.u32 2147483647, %v939_v60  ;;  %v954_v9 = vand.u32 3, %v953_v50 }
 0x263   :  { %v1898_v15 = vsel %vm1891_vm2, %v1894_v49, %v1897_v55  ;;  %v1755_v46 = vshll.u32 %v1754_v42, 30  ;;  %v1778_v40 = vsub.s32 4, %v1754_v42 }
 0x264   :  { %v1899_v20 = vsel %vm1888_vm3, nan, %v1898_v15  ;;  %v943_v25 = vmul.f32 %v942_v62, %v940_v24  ;;  %vm956_vm8 = vcmp.eq.s32.totalorder %v954_v9, 0  ;;  %vm959_vm7 = vcmp.eq.s32.totalorder %v954_v9, 2 }
 0x265   :  { %1915 = vst [vmem:[#allocation2 + $0x78] sm:$0xff] %v1899_v20  ;;  %v1756_v47 = vsub.s32 %v1752_v0, %v1755_v46  ;;  %vm955_vm9 = vcmp.lt.s32.totalorder %v954_v9, 2  ;;  %v1779_v34 = vsel %vm1694_vm11, %v1778_v40, %v1754_v42 }
 0x266   :  { %v944_v11 = vxor.u32 2147483648, %v943_v25  ;;  %v1781_v59 = vsel %vm1693_vm12, 0, %v1779_v34 }
 0x267   :  { %v1758_v3 = vsub.s32 0, %v1756_v47  ;;  %v1785_v27 = vadd.s32 3, %v1781_v59 }
 0x268   :  { %v945_v10 = vsel %vm862_vm4, %v944_v11, %v943_v25 }
 0x269   :  { %v948_v4 = vsel %vm861_vm5, %v3431_v52, %v945_v10  ;;  %v2006_v5 = vmin.u32 %v1758_v3, %v1756_v47  ;;  %v1786_v13 = vand.u32 3, %v1785_v27 }
 0x26a   :  { %2206 = vcosq.f32 %v948_v4 }
 0x26b   :  { %2208 = vsinq.f32 %v948_v4  ;;  %v1760_v30 = vclz %v2006_v5  ;;  %vm1791_vm13 = vcmp.eq.s32.totalorder %v1786_v13, 2  ;;  %vm1788_vm14 = vcmp.eq.s32.totalorder %v1786_v13, 0 }
 0x26c   :  { %vm1787_vm15 = vcmp.lt.s32.totalorder %v1786_v13, 2 }
 0x26d   :  { %v2007_v7 = vadd.s32 4294967294, %v1760_v30 }
 0x26f   :  { %vm2008_vm6 = vcmp.lt.s32.totalorder %v2007_v7, 0 }
 0x270   :  { %v1763_v53 = vsel %vm2008_vm6, 0, %v2007_v7 }
 0x271   :  { %v1764_v39 = vsub.s32 32, %v1763_v53  ;;  %v1768_v14 = vsub.s32 4294967266, %v1763_v53  ;;  %v1765_v41 = vshll.u32 %v1756_v47, %v1763_v53 }
 0x273   :  { %v1766_v48 = vshrl.u32 %v1748_v1, %v1764_v39  ;;  %v1769_v51 = vadd.s32 127, %v1768_v14 }
 0x274   :  { %v2207_v16 = vpop.eup %2206 }
 0x275   :  { %v2209_v8 = vpop.eup %2208  ;;  %v960_v28 = vxor.u32 2147483648, %v2207_v16  ;;  %v1767_v58 = vor.u32 %v1766_v48, %v1765_v41  ;;  %v1770_v63 = vshll.u32 %v1769_v51, 23 }
 0x276   :  { %v957_v61 = vxor.u32 2147483648, %v2209_v8 }
 0x277   :  { %v961_v33 = vsel %vm959_vm7, %v960_v28, %v2209_v8  ;;  %v1771_v6 = vor.u32 4788187, %v1770_v63  ;;  %v1774_v2 = vcvt.s32.f32 %v1767_v58 }
 0x278   :  { %v958_v54 = vsel %vm956_vm8, %v2207_v16, %v957_v61 }
 0x279   :  { %v962_v35 = vsel %vm955_vm9, %v958_v54, %v961_v33  ;;  %v1772_v19 = vand.u32 2147483647, %v1771_v6 }
 0x27a   :  { %v963_v45 = vsel %vm952_vm10, nan, %v962_v35 }
 0x27b   :  { %1906 = vst [vmem:[#allocation2 + $0x30] sm:$0xff] %v963_v45  ;;  %v1775_v38 = vmul.f32 %v1774_v2, %v1772_v19 }
 0x27d   :  { %v1776_v21 = vxor.u32 2147483648, %v1775_v38 }
 0x27f   :  { %v1777_v57 = vsel %vm1694_vm11, %v1776_v21, %v1775_v38 }
 0x280   :  { %v1780_v52 = vsel %vm1693_vm12, %v3524_v17, %v1777_v57 }
 0x281   :  { %2210 = vcosq.f32 %v1780_v52 }
 0x282   :  { %2212 = vsinq.f32 %v1780_v52 }
 0x28b   :  { %v2211_v36 = vpop.eup %2210 }
 0x28c   :  { %v2213_v37 = vpop.eup %2212  ;;  %v1792_v18 = vxor.u32 2147483648, %v2211_v36 }
 0x28d   :  { %v1789_v12 = vxor.u32 2147483648, %v2213_v37 }
 0x28e   :  { %v1793_v44 = vsel %vm1791_vm13, %v1792_v18, %v2213_v37 }
 0x28f   :  { %v1790_v31 = vsel %vm1788_vm14, %v2211_v36, %v1789_v12 }
 0x290   :  { %v1794_v56 = vsel %vm1787_vm15, %v1790_v31, %v1793_v44 }
 0x291   :  { %v1795_v29 = vsel %vm1784_vm0, nan, %v1794_v56 }
 0x292   :  { %1914 = vst [vmem:[#allocation2 + $0x70] sm:$0xff] %v1795_v29 }
 0x293   :  { %2227 = shalt.err (!%p2224_p4)
}
 0x294   :  { %s2228_s5 = scalar_lea.hbm %s3662_s3, 2048 }
 0x295   :  { %p2229_p5 = scmp.ne.s32.totalorder %s3662_s3, %s2228_s5  ;;  %p2232_p6 = scmp.lt.u32.totalorder %s2228_s5, %s3662_s3 }
 0x297   :  { %p2234_p7 = pnand %p2232_p6, %p2229_p5 }
 0x299   :  { %2237 = shalt.err (!%p2234_p7)
}
 0x29a   :  { %s2247_s10 = smov 128   ;;  %s2248_s11 = smov 8  }
 0x29b   :  { %1927 = dma.vmem_to_hbm [thread:$0]  %s1922_s28, 2048, %s3662_s3, [#allocation3], %s2247_s10, %s2247_s10, %s2248_s11  }
 0x29c   :  { %2238 = dma.done.wait [#allocation3], 2048  }
 0x29d   :  { %2239 = vsyncadd [#allocation3], 4294965248 }
 0x29e   :  { %1931 = vsyncpa [#allocation3], 1 }

</bundles_post_ra>
